<compile_context>
chip_gen: v7x
topology: tpu7x:2x2x1
jax: 0.10.0
libtpu: 0.0.40
codegen_flags: <defaults>
</compile_context>

<pallas_src>
import jax
import jax.numpy as jnp
from jax.experimental import pallas as pl
from jax.experimental.pallas import tpu as pltpu

IN_DIM = 1836
HID_DIM = 150
OUT_DIM = 150

# Lane-dense padded hidden/output dims (multiples of 128).
HID_PAD = 256
OUT_PAD = 256


def _round_up(n, m):
    return ((n + m - 1) // m) * m


def mlp_kernel(x_ref, w1_ref, b1_ref, w2_ref, b2_ref, o_ref):
    # In-kernel cast (f32 -> bf16 when needed): cheap VPU work hidden under the
    # x DMA; avoids a separate pad/cast HBM pass in the wrapper.
    x = x_ref[...].astype(w1_ref.dtype)
    # Layer 1: (tb, 1836)bf16 @ (1836, 256)bf16 -> f32 accumulation on the MXU.
    h = jnp.dot(x, w1_ref[...], preferred_element_type=jnp.float32)
    h = jnp.maximum(h + b1_ref[...], 0.0)
    # Layer 2: cast hidden back to the weight dtype for a bf16 MXU pass.
    h = h.astype(w2_ref.dtype)
    o = jnp.dot(h, w2_ref[...], preferred_element_type=jnp.float32)
    o = jnp.maximum(o + b2_ref[...], 0.0)
    o_ref[...] = o.astype(o_ref.dtype)   # bf16 store (lane-dense, unmasked)


def _pick_batch_tile(B, batch_tile):
    """Batch tile that is (a) a multiple of 16 (bf16 sublane packing),
    (b) keeps per-batch padding small, and (c) yields >= 2 grid steps when the
    batch is big enough so the 'parallel' axis shards across v7x's two TCs."""
    n_tiles = max(-(-B // batch_tile), 2 if B >= 32 else 1)
    return _round_up(-(-B // n_tiles), 16)


def mlp_forward(x, w1, b1, w2, b2, *, batch_tile=512,
                weight_dtype=jnp.bfloat16, out_dtype=jnp.float32):
    """Fused MLP forward: relu(relu(x @ w1 + b1) @ w2 + b2).

    x : (B, 1836), f32 or bf16 (bf16 is read as-is; f32 is cast in-kernel).
    w1: (1836, 150)   (nn.Linear weight, pre-transposed to (in, out))
    b1: (150,) or (1, 150)
    w2: (150, 150)
    b2: (150,) or (1, 150)
    Returns (B, 150) in `out_dtype`.
    """
    B, in_dim = x.shape
    assert in_dim == IN_DIM

    tb = _pick_batch_tile(B, batch_tile)

    # Only tiny batches (< one tile) need wrapper-side padding of x; otherwise
    # x streams straight from HBM into the kernel with no extra pass, and a
    # possibly-partial last block is masked by Pallas (rows are independent,
    # so garbage rows only produce garbage output rows that are dropped).
    if B < tb:
        x_k = jnp.zeros((tb, IN_DIM), x.dtype).at[:B].set(x)
    else:
        x_k = x
    Bk = x_k.shape[0]
    grid = (pl.cdiv(Bk, tb),)

    # One-time weight/bias pad + cast (tiny relative to the x stream; ideally
    # done once at parameter-load time by the caller).
    w1p = jnp.zeros((IN_DIM, HID_PAD), weight_dtype).at[:, :HID_DIM].set(
        jnp.asarray(w1, weight_dtype))
    w2p = jnp.zeros((HID_PAD, OUT_PAD), weight_dtype).at[:HID_DIM, :OUT_DIM].set(
        jnp.asarray(w2, weight_dtype))
    # Biases stay f32 (added after f32 accumulation); padded lanes are 0.
    b1p = jnp.zeros((1, HID_PAD), jnp.float32).at[0, :HID_DIM].set(
        jnp.asarray(b1, jnp.float32).reshape(-1))
    b2p = jnp.zeros((1, OUT_PAD), jnp.float32).at[0, :OUT_DIM].set(
        jnp.asarray(b2, jnp.float32).reshape(-1))

    x_bytes = jnp.dtype(x_k.dtype).itemsize
    w_bytes = jnp.dtype(weight_dtype).itemsize
    flops = 2 * Bk * (IN_DIM * HID_PAD + HID_PAD * OUT_PAD)
    bytes_accessed = (
        Bk * IN_DIM * x_bytes             # x stream (dominant)
        + IN_DIM * HID_PAD * w_bytes      # W1
        + HID_PAD * OUT_PAD * w_bytes     # W2
        + (HID_PAD + OUT_PAD) * 4         # biases
        + Bk * OUT_PAD * 2                # bf16 output
    )

    out = pl.pallas_call(
        mlp_kernel,
        out_shape=jax.ShapeDtypeStruct((Bk, OUT_PAD), jnp.bfloat16),
        grid_spec=pltpu.PrefetchScalarGridSpec(
            num_scalar_prefetch=0,
            grid=grid,
            in_specs=[
                pl.BlockSpec((tb, IN_DIM), lambda i: (i, 0)),        # x tile (full last dim)
                pl.BlockSpec((IN_DIM, HID_PAD), lambda i: (0, 0)),   # W1 (VMEM-resident)
                pl.BlockSpec((1, HID_PAD), lambda i: (0, 0)),        # b1
                pl.BlockSpec((HID_PAD, OUT_PAD), lambda i: (0, 0)),  # W2 (VMEM-resident)
                pl.BlockSpec((1, OUT_PAD), lambda i: (0, 0)),        # b2
            ],
            out_specs=pl.BlockSpec((tb, OUT_PAD), lambda i: (i, 0)),
        ),
        compiler_params=pltpu.CompilerParams(
            # Batch steps are independent -> shard across TensorCores (v7x).
            dimension_semantics=("parallel",),
            # tb=1024 with f32 x needs ~18 MiB (double-buffered x/out tiles +
            # resident weights); 48 MiB leaves headroom on v5e/v6e (128 MiB
            # physical) while staying under v7x's 64 MiB physical VMEM.
            vmem_limit_bytes=48 * 1024 * 1024,
        ),
        cost_estimate=pl.CostEstimate(
            flops=flops, transcendentals=0, bytes_accessed=bytes_accessed),
    )(x_k, w1p, b1p, w2p, b2p)

    # Slice away batch + lane padding; upcast the bf16 store for the caller.
    return out[:B, :OUT_DIM].astype(out_dtype)


def init_params(key):
    """Deterministic init mirroring nn.Linear shapes (weights stored transposed)."""
    k1, k2, k3, k4 = jax.random.split(key, 4)
    bound1 = 1.0 / jnp.sqrt(IN_DIM)
    bound2 = 1.0 / jnp.sqrt(HID_DIM)
    w1 = jax.random.uniform(k1, (IN_DIM, HID_DIM), jnp.float32, -bound1, bound1)
    b1 = jax.random.uniform(k2, (HID_DIM,), jnp.float32, -bound1, bound1)
    w2 = jax.random.uniform(k3, (HID_DIM, OUT_DIM), jnp.float32, -bound2, bound2)
    b2 = jax.random.uniform(k4, (OUT_DIM,), jnp.float32, -bound2, bound2)
    return w1, b1, w2, b2


if __name__ == "__main__":
    key = jax.random.PRNGKey(0)
    kx, kp = jax.random.split(key)
    w1, b1, w2, b2 = init_params(kp)

    def ref_forward(x):
        # Mirror the kernel's precision path: bf16 x/weights, f32 accumulate,
        # bf16 hidden re-cast, bf16 output store.
        xb = x.astype(jnp.bfloat16).astype(jnp.float32)
        w1b = w1.astype(jnp.bfloat16).astype(jnp.float32)
        w2b = w2.astype(jnp.bfloat16).astype(jnp.float32)
        h = jnp.maximum(xb @ w1b + b1, 0.0)
        h = h.astype(jnp.bfloat16).astype(jnp.float32)
        o = jnp.maximum(h @ w2b + b2, 0.0)
        return o.astype(jnp.bfloat16).astype(jnp.float32)

    # batch=64: even 2-step grid (2 x 32);  batch=50: partial last block.
    for batch in (64, 50):
        x = jax.random.normal(jax.random.fold_in(kx, batch), (batch, IN_DIM),
                              dtype=jnp.float32)
        out = jax.block_until_ready(mlp_forward(x, w1, b1, w2, b2))
        assert out.shape == (batch, OUT_DIM)
        ref = ref_forward(x)
        assert jnp.allclose(out, ref, atol=1e-2, rtol=1e-2), (
            batch, float(jnp.max(jnp.abs(out - ref))))

    print("KERNEL_OK")
</pallas_src>

<mosaic_0001>
module attributes {stable_mosaic.version = 11 : i64} {
  func.func @mlp_kernel(%arg0: i32, %arg1: memref<32x1836xf32, #tpu.memory_space<vmem>>, %arg2: memref<1836x256xbf16, #tpu.memory_space<vmem>>, %arg3: memref<1x256xf32, #tpu.memory_space<vmem>>, %arg4: memref<256x256xbf16, #tpu.memory_space<vmem>>, %arg5: memref<1x256xf32, #tpu.memory_space<vmem>>, %arg6: memref<32x256xbf16, #tpu.memory_space<vmem>>) attributes {dimension_semantics = [#tpu.dimension_semantics<parallel>], iteration_bounds = array<i64: 2>, scalar_prefetch = 0 : i64, scratch_operands = 0 : i64, tpu.core_type = #tpu.core_type<tc>, window_params = [{transform_indices = @transform_0, window_bounds = array<i64: 32, 1836>}, {pipeline_mode = #tpu.pipeline_mode<synchronous>, transform_indices = @transform_1, window_bounds = array<i64: 1836, 256>}, {pipeline_mode = #tpu.pipeline_mode<synchronous>, transform_indices = @transform_2, window_bounds = array<i64: 1, 256>}, {pipeline_mode = #tpu.pipeline_mode<synchronous>, transform_indices = @transform_3, window_bounds = array<i64: 256, 256>}, {pipeline_mode = #tpu.pipeline_mode<synchronous>, transform_indices = @transform_4, window_bounds = array<i64: 1, 256>}, {transform_indices = @transform_5, window_bounds = array<i64: 32, 256>}]} {
    %c0 = arith.constant 0 : index
    %c0_0 = arith.constant 0 : index
    %0 = vector.load %arg1[%c0, %c0_0] : memref<32x1836xf32, #tpu.memory_space<vmem>>, vector<32x1836xf32>
    %1 = arith.truncf %0 : vector<32x1836xf32> to vector<32x1836xbf16>
    %c0_1 = arith.constant 0 : index
    %c0_2 = arith.constant 0 : index
    %2 = vector.load %arg2[%c0_1, %c0_2] : memref<1836x256xbf16, #tpu.memory_space<vmem>>, vector<1836x256xbf16>
    %cst = arith.constant dense<0.000000e+00> : vector<32x256xf32>
    %3 = tpu.matmul %1, %2, %cst {dimension_numbers = #tpu.dot_dimension_numbers<[1], [0], [0], [1], [0, 0, 1, 1], [], []>} : vector<32x1836xbf16>, vector<1836x256xbf16>, vector<32x256xf32> -> vector<32x256xf32>
    %c0_3 = arith.constant 0 : index
    %c0_4 = arith.constant 0 : index
    %4 = vector.load %arg3[%c0_3, %c0_4] : memref<1x256xf32, #tpu.memory_space<vmem>>, vector<1x256xf32>
    %5 = vector.broadcast %4 : vector<1x256xf32> to vector<32x256xf32>
    %6 = arith.addf %3, %5 : vector<32x256xf32>
    %cst_5 = arith.constant 0.000000e+00 : f32
    %7 = vector.broadcast %cst_5 : f32 to vector<32x256xf32>
    %8 = arith.maximumf %6, %7 : vector<32x256xf32>
    %9 = arith.truncf %8 : vector<32x256xf32> to vector<32x256xbf16>
    %c0_6 = arith.constant 0 : index
    %c0_7 = arith.constant 0 : index
    %10 = vector.load %arg4[%c0_6, %c0_7] : memref<256x256xbf16, #tpu.memory_space<vmem>>, vector<256x256xbf16>
    %cst_8 = arith.constant dense<0.000000e+00> : vector<32x256xf32>
    %11 = tpu.matmul %9, %10, %cst_8 {dimension_numbers = #tpu.dot_dimension_numbers<[1], [0], [0], [1], [0, 0, 1, 1], [], []>} : vector<32x256xbf16>, vector<256x256xbf16>, vector<32x256xf32> -> vector<32x256xf32>
    %c0_9 = arith.constant 0 : index
    %c0_10 = arith.constant 0 : index
    %12 = vector.load %arg5[%c0_9, %c0_10] : memref<1x256xf32, #tpu.memory_space<vmem>>, vector<1x256xf32>
    %13 = vector.broadcast %12 : vector<1x256xf32> to vector<32x256xf32>
    %14 = arith.addf %11, %13 : vector<32x256xf32>
    %cst_11 = arith.constant 0.000000e+00 : f32
    %15 = vector.broadcast %cst_11 : f32 to vector<32x256xf32>
    %16 = arith.maximumf %14, %15 : vector<32x256xf32>
    %17 = arith.truncf %16 : vector<32x256xf32> to vector<32x256xbf16>
    %c0_12 = arith.constant 0 : index
    %c0_13 = arith.constant 0 : index
    %18 = vector.load %arg6[%c0_12, %c0_13] : memref<32x256xbf16, #tpu.memory_space<vmem>>, vector<32x256xbf16>
    tpu.vector_store %arg6[%c0_12, %c0_13], %17 {strides = array<i32>} : memref<32x256xbf16, #tpu.memory_space<vmem>>, vector<32x256xbf16>,
    return
  }
  func.func @transform_0(%arg0: i32) -> (i32, i32) {
    %c0_i32 = arith.constant 0 : i32
    %c0_i32_0 = arith.constant 0 : i32
    return %arg0, %c0_i32 : i32, i32
  }
  func.func @transform_1(%arg0: i32) -> (i32, i32) {
    %c0_i32 = arith.constant 0 : i32
    %c0_i32_0 = arith.constant 0 : i32
    %c0_i32_1 = arith.constant 0 : i32
    return %c0_i32, %c0_i32_0 : i32, i32
  }
  func.func @transform_2(%arg0: i32) -> (i32, i32) {
    %c0_i32 = arith.constant 0 : i32
    %c0_i32_0 = arith.constant 0 : i32
    %c0_i32_1 = arith.constant 0 : i32
    return %c0_i32, %c0_i32_0 : i32, i32
  }
  func.func @transform_3(%arg0: i32) -> (i32, i32) {
    %c0_i32 = arith.constant 0 : i32
    %c0_i32_0 = arith.constant 0 : i32
    %c0_i32_1 = arith.constant 0 : i32
    return %c0_i32, %c0_i32_0 : i32, i32
  }
  func.func @transform_4(%arg0: i32) -> (i32, i32) {
    %c0_i32 = arith.constant 0 : i32
    %c0_i32_0 = arith.constant 0 : i32
    %c0_i32_1 = arith.constant 0 : i32
    return %c0_i32, %c0_i32_0 : i32, i32
  }
  func.func @transform_5(%arg0: i32) -> (i32, i32) {
    %c0_i32 = arith.constant 0 : i32
    %c0_i32_0 = arith.constant 0 : i32
    return %arg0, %c0_i32 : i32, i32
  }
}

</mosaic_0001>

<bundles_post_ra>
// kernel: tpu_custom_call.1
= control target key start
LH: loop header
LB: loop body
LE: loop exit
PB: predicated region body
PF: predicated region fallthrough
CT: control target
= control target key end

     0   :  { %10 = vsyncpa [#allocation3], 0  ;;  %s3935_s0 = inlined_call_operand.hbm [shape: f32[64,1836], index: 0, kind: input, shape index: {}]   ;;  %s3936_s1 = inlined_call_operand.hbm [shape: bf16[1836,256], index: 1, kind: input, shape index: {}]   ;;  %s3937_s2 = inlined_call_operand.vmem [shape: f32[1,256], index: 2, kind: input, shape index: {}]   ;;  %s3938_s3 = inlined_call_operand.hbm [shape: bf16[256,256], index: 3, kind: input, shape index: {}]   ;;  %s3939_s4 = inlined_call_operand.vmem [shape: f32[1,256], index: 4, kind: input, shape index: {}]   ;;  %s3940_s5 = inlined_call_operand.hbm [shape: bf16[64,256], index: 5, kind: output, shape index: {}]  }
   0x1   :  { %12 = vsyncpa [#allocation3 + $0x1], 0 }
   0x2   :  { %13 = vsyncpa [#allocation6], 0 }
   0x3   :  { %14 = vsyncpa [#allocation4], 0 }
   0x4   :  { %16 = vsyncpa [#allocation4 + $0x1], 0  ;;  %s3632_s18 = smov 0   ;;  %s3634_s19 = smov 0  }
   0x5   :  { %s3636_s20 = smov 0   ;;  %s3638_s21 = smov 0  }
   0x6 LB: > { %s3653_s22 = sadd.s32 4294967295, %s3589_s21   ;;  %s2606_s23 = sadd.s32 4294967294, %s3589_s21   ;;  %s3589_s21 = sphi %s3638_s21, %s3960_s21   ;;  %s3585_s20 = sphi %s3636_s20, %s3959_s20   ;;  %s3581_s19 = sphi %s3634_s19, %s3958_s19   ;;  %s3577_s18 = sphi %s3632_s18, %s3957_s18  }
   0x7   : > { %p42_p0 = scmp.ne.s32.totalorder %s3581_s19, %s3577_s18  ;;  %p3941_p1 = scmp.eq.s32.totalorder %s3653_s22, 0 }
   0x8   : > { %p156_p3 = scmp.eq.s32.totalorder %s2606_s23, 1  ;;  %p2607_p5 = scmp.ge.s32.totalorder %s3589_s21, 1 }
   0x9   : > { %p3662_p4 = por %p3941_p1, %p42_p0  ;;  %p163_p7 = scmp.lt.s32.totalorder %s3589_s21, 3 }
   0xa   : > { %p3667_p6 = por %p156_p3, %p42_p0  ;;  %s3591_s27 = smov [#allocation5]  }
   0xb   : > { %s3944_s24 = scalar_select %p3662_p4, 1, 0 }
   0xc   : > { %s3945_s25 = scalar_select %p3667_p6, 1, 0 }
   0xd   : > { %p3672_p8 = pnand %p2607_p5, %p163_p7  ;;  %s175_s28 = sshll.u32 %s3591_s27, 4  ;;  %s3676_s28 = int_to_ptr.vmem [resolvable:$true] %s175_s28 }
   0xe   : > { %s3592_s30 = smov [#allocation7]   ;;  %s3433_s9 = scalar_lea.hbm %s3936_s1, 29440 }
   0xf   : > { %p2978_p9 = pneg %p3672_p8  ;;  %s191_s6 = sshll.u32 %s3592_s30, 4  ;;  %s3687_s6 = int_to_ptr.vmem [resolvable:$true] %s191_s6 }
  0x10   : > { %p3434_p12 = scmp.ne.s32.totalorder %s3936_s1, %s3433_s9  ;;  %p3440_p5 = scmp.lt.u32.totalorder %s3433_s9, %s3936_s1 }
  0x11   : > { %p3683_p11 = pnand %p2978_p9, %p3941_p1 }
  0x13   : > { %p3435_p13 = pneg %p3683_p11 }
  0x15   : > { %p3436_p0 = pnand %p3435_p13, %p3434_p12 }
  0x17   : > { %p3437_p3 = pneg %p3436_p0 }
  0x19   : > { %p3442_p7 = pnand %p3440_p5, %p3437_p3 }
  0x1b   : > { %3445 = shalt.err (!%p3442_p7)
}
  0x1c   : > { %s3446_s14 = scalar_lea.vmem %s3676_s28, 29440  ;;  %p3454_p2 = scmp.lt.s32.totalorder %s3676_s28, %s3676_s28 }
  0x1d   : > { %p3447_p9 = scmp.ne.s32.totalorder %s3676_s28, %s3446_s14  ;;  %p3455_p12 = scmp.lt.s32.totalorder %s3446_s14, %s3446_s14 }
  0x1f   : > { %p3449_p10 = pnand %p3447_p9, %p3435_p13  ;;  %p3456_p0 = por %p3455_p12, %p3454_p2 }
  0x21   : > { %p3450_p1 = pneg %p3449_p10 }
  0x23   : > { %p3457_p6 = pnand %p3456_p0, %p3450_p1 }
  0x25   : > { %3460 = shalt.err (!%p3457_p6)
}
  0x26   : > { %s3593_s15 = smov 128   ;;  %s3594_s16 = smov 8  }
  0x27   : > { %2981 = dma.hbm_to_vmem [thread:$0]  (!%p3683_p11), %s3936_s1, 29440, %s3676_s28, [#allocation6], %s3593_s15, %s3593_s15, %s3594_s16  }
  0x28   : > { %s3461_s7 = scalar_lea.hbm %s3938_s3, 4096 }
  0x29   : > { %p3462_p2 = scmp.ne.s32.totalorder %s3938_s3, %s3461_s7  ;;  %p3468_p10 = scmp.lt.u32.totalorder %s3461_s7, %s3938_s3 }
  0x2b   : > { %p3464_p1 = pnand %p3462_p2, %p3435_p13 }
  0x2d   : > { %p3465_p6 = pneg %p3464_p1 }
  0x2f   : > { %p3470_p3 = pnand %p3468_p10, %p3465_p6 }
  0x31   : > { %3473 = shalt.err (!%p3470_p3)
}
  0x32   : > { %s3474_s28 = scalar_lea.vmem %s3687_s6, 4096  ;;  %p3482_p12 = scmp.lt.s32.totalorder %s3687_s6, %s3687_s6 }
  0x33   : > { %p3475_p5 = scmp.ne.s32.totalorder %s3687_s6, %s3474_s28  ;;  %p3483_p0 = scmp.lt.s32.totalorder %s3474_s28, %s3474_s28 }
  0x35   : > { %p3477_p7 = pnand %p3475_p5, %p3435_p13  ;;  %p3484_p2 = por %p3483_p0, %p3482_p12 }
  0x37   : > { %p3478_p9 = pneg %p3477_p7 }
  0x39   : > { %p3485_p1 = pnand %p3484_p2, %p3478_p9 }
  0x3b   : > { %3488 = shalt.err (!%p3485_p1)
}
  0x3c   : > { %2984 = dma.hbm_to_vmem [thread:$0]  (!%p3683_p11), %s3938_s3, 4096, %s3687_s6, [#allocation6], %s3593_s15, %s3593_s15, %s3594_s16  }
  0x3d   : > { %s3742_s14 = sadd.s32 1, %s3589_s21   ;;  %s29_s29 = sadd.s32 1, %s3585_s20 }
  0x3e   : > { %s26_s17 = ssub.s32 %s3589_s21, %s3742_s14  ;;  %p36_p13 = scmp.ne.s32.totalorder %s3585_s20, %s3581_s19 }
  0x3f   : > { %p27_p6 = scmp.eq.s32.totalorder %s26_s17, 0  ;;  %p37_p10 = scmp.eq.s32.totalorder %s3589_s21, 0 }
  0x40   : > { %p3948_p3 = scmp.eq.s32.totalorder %s3653_s22, 1  ;;  %p2995_p7 = scmp.lt.s32.totalorder %s3589_s21, 2 }
  0x41   : > { %s3758_s27 = scalar_select %p27_p6, %s3585_s20, %s29_s29  }
  0x42   : > { %p3752_p5 = por %p3948_p3, %p36_p13  ;;  %p38_p9 = por %p37_p10, %p36_p13 }
  0x43   : > { %s208_s30 = sand.u32 1, %s3585_s20   ;;  %s2964_s6 = smul.u32 7680, %s3589_s21 }
  0x44   : > { %s3949_s23 = scalar_select %p3752_p5, 1, 0 }
  0x45   : > { %s2963_s7 = smul.u32 480, %s208_s30  ;;  %p3762_p11 = pnand %p2995_p7, %p38_p9 }
  0x46   : > { %s3769_s9 = scalar_lea.hbm %s3935_s0, %s2964_s6  ;;  %s3773_s28 = scalar_lea.sflag [#allocation3], %s208_s30 }
  0x47   : > { %s212_s10 = scalar_lea.vmem [#allocation2], %s2963_s7  ;;  %s3489_s12 = scalar_lea.hbm %s3769_s9, 7680 }
  0x48   : > { %s220_s11 = sshll.u32 %s212_s10, 4  ;;  %p3490_p12 = scmp.ne.s32.totalorder %s3769_s9, %s3489_s12  ;;  %s3771_s11 = int_to_ptr.vmem [resolvable:$true] %s220_s11 }
  0x49   : > { %p3491_p0 = pneg %p3762_p11  ;;  %s3494_s17 = scalar_lea.hbm %s3935_s0, 15360 }
  0x4a   : > { %p3495_p13 = scmp.lt.u32.totalorder %s3769_s9, %s3935_s0  ;;  %p3496_p6 = scmp.lt.u32.totalorder %s3494_s17, %s3489_s12 }
  0x4b   : > { %p3492_p2 = pnand %p3491_p0, %p3490_p12  ;;  %p3498_p3 = scmp.lt.u32.totalorder %s3489_s12, %s3769_s9 }
  0x4c   : > { %p3497_p10 = por %p3496_p6, %p3495_p13 }
  0x4d   : > { %p3493_p1 = pneg %p3492_p2 }
  0x4e   : > { %p3499_p7 = por %p3498_p3, %p3497_p10 }
  0x50   : > { %p3500_p9 = pnand %p3499_p7, %p3493_p1 }
  0x52   : > { %3503 = shalt.err (!%p3500_p9)
}
  0x53   : > { %s3504_s30 = scalar_lea.vmem %s3771_s11, 7680  ;;  %s3595_s7 = smov [#allocation2]  }
  0x54   : > { %p3505_p12 = scmp.ne.s32.totalorder %s3771_s11, %s3504_s30  ;;  %s3509_s8 = sshll.u32 %s3595_s7, 4  ;;  %s3510_s8 = int_to_ptr.vmem [resolvable:$false] %s3509_s8 }
  0x55   : > { %s3511_s10 = scalar_lea.vmem %s3510_s8, 15360  ;;  %p3512_p4 = scmp.lt.s32.totalorder %s3771_s11, %s3510_s8 }
  0x56   : > { %p3507_p2 = pnand %p3505_p12, %p3491_p0  ;;  %p3513_p13 = scmp.lt.s32.totalorder %s3511_s10, %s3504_s30 }
  0x58   : > { %p3508_p5 = pneg %p3507_p2  ;;  %p3514_p6 = por %p3513_p13, %p3512_p4 }
  0x5a   : > { %p3515_p10 = pnand %p3514_p6, %p3508_p5 }
  0x5c   : > { %3518 = shalt.err (!%p3515_p10)
}
  0x5d   : > { %s3596_s12 = smov 1920   ;;  %s3597_s13 = smov 120  }
  0x5e   : > { %2988 = dma.hbm_to_vmem [thread:$0]  (!%p3762_p11), %s3769_s9, 7680, %s3771_s11, %s3773_s28, %s3596_s12, %s3596_s12, %s3597_s13  }
  0x5f   : > { %232 = sbr.rel (%p3672_p8) target bundleno = 846 (0x34e), region = 40  ;;  %s3804_s29 = sand.u32 (!%p3672_p8), 1, %s3581_s19  }
  0x60   : > { %s2965_s17 = smul.u32 (!%p3672_p8), 480, %s3804_s29  ;;  %s235_s6 = scalar_lea.sflag (!%p3672_p8), [#allocation3], %s3804_s29 }
  0x61   : > { %p3951_p4 = scmp.ne.s32.totalorder (!%p3672_p8), %s3944_s24, 0 }
  0x62   : > { %s3808_s16 = scalar_lea.vmem (!%p3672_p8), [#allocation2], %s2965_s17 }
  0x66   : > { %3564 = dma.done.wait (%p3951_p4), %s235_s6, 7680  }
  0x67   : > { %3566 = vsyncadd (%p3951_p4), %s235_s6, 4294959616  ;;  %p3952_p5 = scmp.eq.s32.totalorder %s3653_s22, 0 }
  0x69   : > { %3568 = dma.done.wait (%p3952_p5), [#allocation6], 33536   ;;  %p3953_p8 = pmov %p3952_p5 }
  0x6a   : > { %v3040_v0 = vld [vmem:[#allocation5 + $0x4] ss:$8 sps:$4 sm:$0xff]   ;;  %v3044_v2 = vld [vmem:[#allocation5] ss:$8 sps:$4 sm:$0xff]   ;;  %v3046_v4 = vld [vmem:[#allocation5 + $0x14] ss:$8 sps:$4 sm:$0xff]  }
  0x6b   : > { %3570 = vsyncadd (%p3953_p8), [#allocation6], 4294933760  ;;  %v3042_v1 = vld [vmem:[#allocation5 + $0x304] ss:$8 sps:$4 sm:$0xff]   ;;  %1770 = vmatprep.subr.bf16.mxu1 %v3040_v0  ;;  %v3045_v3 = vld [vmem:[#allocation5 + $0x300] ss:$8 sps:$4 sm:$0xff]  }
  0x6c   : > { %1929 = vmatprep.subr.bf16.mxu0 %v3042_v1  ;;  %1771 = vmatpush1.bf16.msra.mxu1 %v3044_v2  ;;  %v3048_v5 = vld [vmem:[#allocation5 + $0x314] ss:$8 sps:$4 sm:$0xff]   ;;  %v3050_v6 = vld [vmem:[#allocation5 + $0x10] ss:$8 sps:$4 sm:$0xff]   ;;  %v3052_v8 = vld [vmem:[#allocation5 + $0x24] ss:$8 sps:$4 sm:$0xff]  }
  0x6d   : > { %1930 = vmatpush1.bf16.msra.mxu0 %v3045_v3  ;;  %1772 = vmatprep.subr.bf16.mxu1 %v3046_v4  ;;  %v3051_v7 = vld [vmem:[#allocation5 + $0x310] ss:$8 sps:$4 sm:$0xff]   ;;  %v3054_v9 = vld [vmem:[#allocation5 + $0x324] ss:$8 sps:$4 sm:$0xff]   ;;  %v3056_v10 = vld [vmem:[#allocation5 + $0x20] ss:$8 sps:$4 sm:$0xff]  }
  0x6e   : > { %1931 = vmatprep.subr.bf16.mxu0 %v3048_v5  ;;  %v3057_v11 = vld [vmem:[#allocation5 + $0x320] ss:$8 sps:$4 sm:$0xff]   ;;  %v3058_v12 = vld [vmem:[#allocation5 + $0x34] ss:$8 sps:$4 sm:$0xff]   ;;  %v3062_v14 = vld [vmem:[#allocation5 + $0x30] ss:$8 sps:$4 sm:$0xff]  }
  0x6f   : > { %v3060_v13 = vld [vmem:[#allocation5 + $0x334] ss:$8 sps:$4 sm:$0xff]   ;;  %v3063_v15 = vld [vmem:[#allocation5 + $0x330] ss:$8 sps:$4 sm:$0xff]   ;;  %v3064_v16 = vld [vmem:[#allocation5 + $0x44] ss:$8 sps:$4 sm:$0xff]  }
  0x70   : > { %1773 = vmatpush1.bf16.msra.mxu1 %v3050_v6  ;;  %v3066_v17 = vld [vmem:[#allocation5 + $0x344] ss:$8 sps:$4 sm:$0xff]   ;;  %v3068_v18 = vld [vmem:[#allocation5 + $0x40] ss:$8 sps:$4 sm:$0xff]   ;;  %v3070_v20 = vld [vmem:[#allocation5 + $0x54] ss:$8 sps:$4 sm:$0xff]  }
  0x71   : > { %1932 = vmatpush1.bf16.msra.mxu0 %v3051_v7  ;;  %1774 = vmatprep.subr.bf16.mxu1 %v3052_v8  ;;  %v3069_v19 = vld [vmem:[#allocation5 + $0x340] ss:$8 sps:$4 sm:$0xff]   ;;  %v3072_v21 = vld [vmem:[#allocation5 + $0x354] ss:$8 sps:$4 sm:$0xff]   ;;  %v3074_v22 = vld [vmem:[#allocation5 + $0x50] ss:$8 sps:$4 sm:$0xff]  }
  0x72   : > { %1933 = vmatprep.subr.bf16.mxu0 %v3054_v9  ;;  %v3075_v23 = vld [vmem:[#allocation5 + $0x350] ss:$8 sps:$4 sm:$0xff]   ;;  %v3076_v24 = vld [vmem:[#allocation5 + $0x64] ss:$8 sps:$4 sm:$0xff]   ;;  %v3080_v26 = vld [vmem:[#allocation5 + $0x60] ss:$8 sps:$4 sm:$0xff]  }
  0x73   : > { %v3078_v25 = vld [vmem:[#allocation5 + $0x364] ss:$8 sps:$4 sm:$0xff]   ;;  %v3081_v27 = vld [vmem:[#allocation5 + $0x360] ss:$8 sps:$4 sm:$0xff]   ;;  %v3082_v28 = vld [vmem:[#allocation5 + $0x74] ss:$8 sps:$4 sm:$0xff]  }
  0x74   : > { %1775 = vmatpush1.bf16.msra.mxu1 %v3056_v10  ;;  %v3084_v29 = vld [vmem:[#allocation5 + $0x374] ss:$8 sps:$4 sm:$0xff]   ;;  %v3086_v30 = vld [vmem:[#allocation5 + $0x70] ss:$8 sps:$4 sm:$0xff]   ;;  %v3088_v32 = vld [vmem:[#allocation5 + $0x84] ss:$8 sps:$4 sm:$0xff]  }
  0x75   : > { %1934 = vmatpush1.bf16.msra.mxu0 %v3057_v11  ;;  %1776 = vmatprep.subr.bf16.mxu1 %v3058_v12  ;;  %v3087_v31 = vld [vmem:[#allocation5 + $0x370] ss:$8 sps:$4 sm:$0xff]   ;;  %v3090_v33 = vld [vmem:[#allocation5 + $0x384] ss:$8 sps:$4 sm:$0xff]   ;;  %v3092_v34 = vld [vmem:[#allocation5 + $0x80] ss:$8 sps:$4 sm:$0xff]  }
  0x76   : > { %1935 = vmatprep.subr.bf16.mxu0 %v3060_v13  ;;  %v3093_v35 = vld [vmem:[#allocation5 + $0x380] ss:$8 sps:$4 sm:$0xff]   ;;  %v3094_v36 = vld [vmem:[#allocation5 + $0x94] ss:$8 sps:$4 sm:$0xff]   ;;  %v3098_v38 = vld [vmem:[#allocation5 + $0x90] ss:$8 sps:$4 sm:$0xff]  }
  0x77   : > { %v3096_v37 = vld [vmem:[#allocation5 + $0x394] ss:$8 sps:$4 sm:$0xff]   ;;  %v3099_v39 = vld [vmem:[#allocation5 + $0x390] ss:$8 sps:$4 sm:$0xff]   ;;  %v3100_v40 = vld [vmem:[#allocation5 + $0xa4] ss:$8 sps:$4 sm:$0xff]  }
  0x78   : > { %1777 = vmatpush1.bf16.msra.mxu1 %v3062_v14  ;;  %v3102_v41 = vld [vmem:[#allocation5 + $0x3a4] ss:$8 sps:$4 sm:$0xff]   ;;  %v3104_v42 = vld [vmem:[#allocation5 + $0xa0] ss:$8 sps:$4 sm:$0xff]   ;;  %v3106_v44 = vld [vmem:[#allocation5 + $0xb4] ss:$8 sps:$4 sm:$0xff]  }
  0x79   : > { %1936 = vmatpush1.bf16.msra.mxu0 %v3063_v15  ;;  %1778 = vmatprep.subr.bf16.mxu1 %v3064_v16  ;;  %v3105_v43 = vld [vmem:[#allocation5 + $0x3a0] ss:$8 sps:$4 sm:$0xff]   ;;  %v3108_v45 = vld [vmem:[#allocation5 + $0x3b4] ss:$8 sps:$4 sm:$0xff]   ;;  %v3110_v46 = vld [vmem:[#allocation5 + $0xb0] ss:$8 sps:$4 sm:$0xff]  }
  0x7a   : > { %1937 = vmatprep.subr.bf16.mxu0 %v3066_v17  ;;  %v3111_v47 = vld [vmem:[#allocation5 + $0x3b0] ss:$8 sps:$4 sm:$0xff]   ;;  %v277_v48 = vld [vmem:[%s3808_s16 + $0x8] sm:$0xff]  ;;  %v292_v49 = vld [vmem:[%s3808_s16 + $0x80] sm:$0xff]  ;;  %vm1763_vm0 = vcmask 1045504   ;;  %vm1756_vm1 = vcmask 359424  }
  0x7b   : > { %v3112_v50 = vld [vmem:[#allocation5 + $0xc4] ss:$8 sps:$4 sm:$0xff]   ;;  %v337_v52 = vpack.c.bf16 %v292_v49, %v277_v48  ;;  %v283_v53 = vld [vmem:[%s3808_s16 + $0x38] sm:$0xff]  ;;  %v298_v54 = vld [vmem:[%s3808_s16 + $0xb0] sm:$0xff]  ;;  %s2617_s11 = sshll.u32 %s3804_s29, 5  ;;  %s2898_s7 = sshll.u32 %s3653_s22, 9 }
  0x7c   : > { %1779 = vmatpush1.bf16.msra.mxu1 %v3068_v18  ;;  %v3114_v51 = vld [vmem:[#allocation5 + $0x3c4] ss:$8 sps:$4 sm:$0xff]   ;;  %v343_v55 = vpack.c.bf16 %v298_v54, %v283_v53  ;;  %v3116_v56 = vld [vmem:[#allocation5 + $0xc0] ss:$8 sps:$4 sm:$0xff]   ;;  %v3118_v58 = vld [vmem:[#allocation5 + $0xd4] ss:$8 sps:$4 sm:$0xff]   ;;  %s3891_s12 = scalar_lea.hbm %s3940_s5, %s2898_s7 }
  0x7d   : > { %1938 = vmatpush1.bf16.msra.mxu0 %v3069_v19  ;;  %1780 = vmatprep.subr.bf16.mxu1 %v3070_v20  ;;  %v3117_v57 = vld [vmem:[#allocation5 + $0x3c0] ss:$8 sps:$4 sm:$0xff]   ;;  %v3120_v59 = vld [vmem:[#allocation5 + $0x3d4] ss:$8 sps:$4 sm:$0xff]   ;;  %v3122_v60 = vld [vmem:[#allocation5 + $0xd0] ss:$8 sps:$4 sm:$0xff]  }
  0x7e   : > { %1939 = vmatprep.subr.bf16.mxu0 %v3072_v21  ;;  %1802 = vmatprep.mubr.bf16.mxu1 %v337_v52  ;;  %v3123_v61 = vld [vmem:[#allocation5 + $0x3d0] ss:$8 sps:$4 sm:$0xff]   ;;  %v3124_v62 = vld [vmem:[#allocation5 + $0xe4] ss:$8 sps:$4 sm:$0xff]   ;;  %v3128_v0 = vld [vmem:[#allocation5 + $0xe0] ss:$8 sps:$4 sm:$0xff]  }
  0x7f   : > { %1961 = vmatprep.mubr.bf16.mxu0 %v343_v55  ;;  %v3126_v63 = vld [vmem:[#allocation5 + $0x3e4] ss:$8 sps:$4 sm:$0xff]   ;;  %v3129_v1 = vld [vmem:[#allocation5 + $0x3e0] ss:$8 sps:$4 sm:$0xff]   ;;  %v3130_v2 = vld [vmem:[#allocation5 + $0xf4] ss:$8 sps:$4 sm:$0xff]  }
  0x80   : > { %1781 = vmatpush1.bf16.msra.mxu1 %v3074_v22  ;;  %v3132_v3 = vld [vmem:[#allocation5 + $0x3f4] ss:$8 sps:$4 sm:$0xff]   ;;  %v3134_v4 = vld [vmem:[#allocation5 + $0xf0] ss:$8 sps:$4 sm:$0xff]   ;;  %v276_v6 = vld [vmem:[%s3808_s16] sm:$0xff]  ;;  %s272_s28 = scalar_lea.vmem [#allocation8], %s2617_s11 }
  0x81   : > { %1940 = vmatpush1.bf16.msra.mxu0 %v3075_v23  ;;  %1782 = vmatprep.subr.bf16.mxu1 %v3076_v24  ;;  %v3135_v5 = vld [vmem:[#allocation5 + $0x3f0] ss:$8 sps:$4 sm:$0xff]   ;;  %v3138_v7 = vld [vmem:[#allocation5 + $0x104] ss:$8 sps:$4 sm:$0xff]   ;;  %v3136_v12 = vld [vmem:[#allocation5 + $0x100] ss:$8 sps:$4 sm:$0xff]  }
  0x82   : > { %1941 = vmatprep.subr.bf16.mxu0 %v3078_v25  ;;  %v291_v8 = vld [vmem:[%s3808_s16 + $0x78] sm:$0xff]  ;;  %v282_v9 = vld [vmem:[%s3808_s16 + $0x30] sm:$0xff]  ;;  %v297_v10 = vld [vmem:[%s3808_s16 + $0xa8] sm:$0xff]  ;;  %s2514_s30 = sshll.u32 %s272_s28, 4  ;;  %s2500_s13 = scalar_lea.sflag [#allocation4], %s3804_s29  ;;  %s3886_s30 = int_to_ptr.vmem [resolvable:$true] %s2514_s30 }
  0x83   : > { %v3141_v11 = vld [vmem:[#allocation5 + $0x404] ss:$8 sps:$4 sm:$0xff]   ;;  %v3139_v13 = vld [vmem:[#allocation5 + $0x400] ss:$8 sps:$4 sm:$0xff]   ;;  %v336_v14 = vpack.c.bf16 %v291_v8, %v276_v6  ;;  %v342_v15 = vpack.c.bf16 %v297_v10, %v282_v9  ;;  %v3144_v16 = vld [vmem:[#allocation5 + $0x114] ss:$8 sps:$4 sm:$0xff]  }
  0x84   : > { %1783 = vmatpush1.bf16.msra.mxu1 %v3080_v26  ;;  %v3147_v17 = vld [vmem:[#allocation5 + $0x414] ss:$8 sps:$4 sm:$0xff]   ;;  %v3142_v18 = vld [vmem:[#allocation5 + $0x110] ss:$8 sps:$4 sm:$0xff]   ;;  %v3150_v20 = vld [vmem:[#allocation5 + $0x124] ss:$8 sps:$4 sm:$0xff]  }
  0x85   : > { %1942 = vmatpush1.bf16.msra.mxu0 %v3081_v27  ;;  %1784 = vmatprep.subr.bf16.mxu1 %v3082_v28  ;;  %v3145_v19 = vld [vmem:[#allocation5 + $0x410] ss:$8 sps:$4 sm:$0xff]   ;;  %v3153_v21 = vld [vmem:[#allocation5 + $0x424] ss:$8 sps:$4 sm:$0xff]   ;;  %v3148_v22 = vld [vmem:[#allocation5 + $0x120] ss:$8 sps:$4 sm:$0xff]  }
  0x86   : > { %1943 = vmatprep.subr.bf16.mxu0 %v3084_v29  ;;  %v3151_v23 = vld [vmem:[#allocation5 + $0x420] ss:$8 sps:$4 sm:$0xff]   ;;  %v3156_v24 = vld [vmem:[#allocation5 + $0x134] ss:$8 sps:$4 sm:$0xff]   ;;  %v3154_v26 = vld [vmem:[#allocation5 + $0x130] ss:$8 sps:$4 sm:$0xff]  }
  0x87   : > { %v3159_v25 = vld [vmem:[#allocation5 + $0x434] ss:$8 sps:$4 sm:$0xff]   ;;  %v3157_v27 = vld [vmem:[#allocation5 + $0x430] ss:$8 sps:$4 sm:$0xff]   ;;  %v3162_v28 = vld [vmem:[#allocation5 + $0x144] ss:$8 sps:$4 sm:$0xff]  }
  0x88   : > { %1785 = vmatpush1.bf16.msra.mxu1 %v3086_v30  ;;  %v3165_v29 = vld [vmem:[#allocation5 + $0x444] ss:$8 sps:$4 sm:$0xff]   ;;  %v3160_v30 = vld [vmem:[#allocation5 + $0x140] ss:$8 sps:$4 sm:$0xff]   ;;  %v327_v49 = vld [vmem:[%s3808_s16 + $0x198] sm:$0xff]  ;;  %s3519_s17 = scalar_lea.vmem %s3886_s30, 512 }
  0x89   : > { %1944 = vmatpush1.bf16.msra.mxu0 %v3087_v31  ;;  %1786 = vmatprep.subr.bf16.mxu1 %v3088_v32  ;;  %v3163_v31 = vld [vmem:[#allocation5 + $0x440] ss:$8 sps:$4 sm:$0xff]   ;;  %v3168_v32 = vld [vmem:[#allocation5 + $0x154] ss:$8 sps:$4 sm:$0xff]   ;;  %v3178_v54 = vld [vmem:[#allocation5 + $0x170] ss:$8 sps:$4 sm:$0xff]   ;;  %p3520_p11 = scmp.ne.s32.totalorder %s3886_s30, %s3519_s17 }
  0x8a   : > { %1945 = vmatprep.subr.bf16.mxu0 %v3090_v33  ;;  %v3171_v33 = vld [vmem:[#allocation5 + $0x454] ss:$8 sps:$4 sm:$0xff]   ;;  %v312_v48 = vld [vmem:[%s3808_s16 + $0x120] sm:$0xff]  ;;  %v3181_v55 = vld [vmem:[#allocation5 + $0x470] ss:$8 sps:$4 sm:$0xff]   ;;  %p3954_p0 = scmp.ne.s32.totalorder %s3949_s23, 0 }
  0x8b   : > { %v357_v52 = vpack.c.bf16 %v327_v49, %v312_v48  ;;  %v3183_v53 = vld [vmem:[#allocation5 + $0x474] ss:$8 sps:$4 sm:$0xff]   ;;  %v3198_v6 = vld [vmem:[#allocation5 + $0x1a4] ss:$8 sps:$4 sm:$0xff]   ;;  %v3196_v8 = vld [vmem:[#allocation5 + $0x1a0] ss:$8 sps:$4 sm:$0xff]  }
  0x8c   : > { %1787 = vmatpush1.bf16.msra.mxu1 %v3092_v34  ;;  %v3166_v34 = vld [vmem:[#allocation5 + $0x150] ss:$8 sps:$4 sm:$0xff]   ;;  %v3199_v9 = vld [vmem:[#allocation5 + $0x4a0] ss:$8 sps:$4 sm:$0xff]   ;;  %v3204_v10 = vld [vmem:[#allocation5 + $0x1b4] ss:$8 sps:$4 sm:$0xff]   ;;  %p3521_p1 = pnand %p3520_p11, %p3954_p0 }
  0x8d   : > { %1946 = vmatpush1.bf16.msra.mxu0 %v3093_v35  ;;  %1788 = vmatprep.subr.bf16.mxu1 %v3094_v36  ;;  %v3169_v35 = vld [vmem:[#allocation5 + $0x450] ss:$8 sps:$4 sm:$0xff]   ;;  %s3599_s22 = smov [#allocation8]  }
  0x8e   : > { %1947 = vmatprep.subr.bf16.mxu0 %v3096_v37  ;;  %v307_v36 = vld [vmem:[%s3808_s16 + $0xf8] sm:$0xff]  ;;  %v322_v37 = vld [vmem:[%s3808_s16 + $0x170] sm:$0xff]  ;;  %p3522_p3 = pneg %p3521_p1  ;;  %s3523_s6 = sshll.u32 %s3599_s22, 4  ;;  %s3524_s6 = int_to_ptr.vmem [resolvable:$false] %s3523_s6 }
  0x8f   : > { %v323_v49 = vld [vmem:[%s3808_s16 + $0x178] sm:$0xff]  ;;  %p3526_p7 = scmp.lt.s32.totalorder %s3886_s30, %s3524_s6 }
  0x90   : > { %1789 = vmatpush1.bf16.msra.mxu1 %v3098_v38  ;;  %v3174_v38 = vld [vmem:[#allocation5 + $0x164] ss:$8 sps:$4 sm:$0xff]  }
  0x91   : > { %1948 = vmatpush1.bf16.msra.mxu0 %v3099_v39  ;;  %1790 = vmatprep.subr.bf16.mxu1 %v3100_v40  ;;  %v3177_v39 = vld [vmem:[#allocation5 + $0x464] ss:$8 sps:$4 sm:$0xff]   ;;  %v352_v40 = vpack.c.bf16 %v322_v37, %v307_v36  ;;  %v3232_v36 = vld [vmem:[#allocation5 + $0x200] ss:$8 sps:$4 sm:$0xff]  }
  0x92   : > { %1949 = vmatprep.subr.bf16.mxu0 %v3102_v41  ;;  %v313_v41 = vld [vmem:[%s3808_s16 + $0x128] sm:$0xff] }
  0x93   : > { %v3235_v37 = vld [vmem:[#allocation5 + $0x500] ss:$8 sps:$4 sm:$0xff]  }
  0x94   : > { %1791 = vmatpush1.bf16.msra.mxu1 %v3104_v42  ;;  %v328_v42 = vld [vmem:[%s3808_s16 + $0x1a0] sm:$0xff] }
  0x95   : > { %1950 = vmatpush1.bf16.msra.mxu0 %v3105_v43  ;;  %1792 = vmatprep.subr.bf16.mxu1 %v3106_v44  ;;  %v3172_v43 = vld [vmem:[#allocation5 + $0x160] ss:$8 sps:$4 sm:$0xff]  }
  0x96   : > { %1951 = vmatprep.subr.bf16.mxu0 %v3108_v45  ;;  %v3175_v44 = vld [vmem:[#allocation5 + $0x460] ss:$8 sps:$4 sm:$0xff]   ;;  %v358_v45 = vpack.c.bf16 %v328_v42, %v313_v41  ;;  %v3243_v41 = vld [vmem:[#allocation5 + $0x514] ss:$8 sps:$4 sm:$0xff]   ;;  %v3238_v42 = vld [vmem:[#allocation5 + $0x210] ss:$8 sps:$4 sm:$0xff]  }
  0x98   : > { %1793 = vmatpush1.bf16.msra.mxu1 %v3110_v46  ;;  %v306_v46 = vld [vmem:[%s3808_s16 + $0xf0] sm:$0xff] }
  0x99   : > { %1952 = vmatpush1.bf16.msra.mxu0 %v3111_v47  ;;  %1794 = vmatprep.subr.bf16.mxu1 %v3112_v50  ;;  %v321_v47 = vld [vmem:[%s3808_s16 + $0x168] sm:$0xff]  ;;  %v3180_v50 = vld [vmem:[#allocation5 + $0x174] ss:$8 sps:$4 sm:$0xff]  }
  0x9a   : > { %1953 = vmatprep.subr.bf16.mxu0 %v3114_v51  ;;  %v351_v51 = vpack.c.bf16 %v321_v47, %v306_v46  ;;  %v324_v46 = vld [vmem:[%s3808_s16 + $0x180] sm:$0xff] }
  0x9b   : > { %v308_v47 = vld [vmem:[%s3808_s16 + $0x100] sm:$0xff] }
  0x9c   : > { %1795 = vmatpush1.bf16.msra.mxu1 %v3116_v56  ;;  %v279_v56 = vld [vmem:[%s3808_s16 + $0x18] sm:$0xff] }
  0x9d   : > { %1954 = vmatpush1.bf16.msra.mxu0 %v3117_v57  ;;  %1796 = vmatprep.subr.bf16.mxu1 %v3118_v58  ;;  %v294_v57 = vld [vmem:[%s3808_s16 + $0x90] sm:$0xff]  ;;  %v3186_v58 = vld [vmem:[#allocation5 + $0x184] ss:$8 sps:$4 sm:$0xff]  }
  0x9e   : > { %1955 = vmatprep.subr.bf16.mxu0 %v3120_v59  ;;  %v3189_v59 = vld [vmem:[#allocation5 + $0x484] ss:$8 sps:$4 sm:$0xff]  }
  0xa0   : > { %1797 = vmatpush1.bf16.msra.mxu1 %v3122_v60  ;;  %v339_v60 = vpack.c.bf16 %v294_v57, %v279_v56  ;;  %v353_v56 = vpack.c.bf16 %v323_v49, %v308_v47  ;;  %v314_v57 = vld [vmem:[%s3808_s16 + $0x130] sm:$0xff]  ;;  %v3321_v47 = vld [vmem:[#allocation5 + $0x5e4] ss:$8 sps:$4 sm:$0xff]   ;;  %v3319_v49 = vld [vmem:[#allocation5 + $0x5e0] ss:$8 sps:$4 sm:$0xff]  }
  0xa1   : > { %1956 = vmatpush1.bf16.msra.mxu0 %v3123_v61  ;;  %1798 = vmatprep.subr.bf16.mxu1 %v3124_v62  ;;  %v285_v61 = vld [vmem:[%s3808_s16 + $0x48] sm:$0xff]  ;;  %v300_v62 = vld [vmem:[%s3808_s16 + $0xc0] sm:$0xff] }
  0xa2   : > { %1957 = vmatprep.subr.bf16.mxu0 %v3126_v63  ;;  %v345_v63 = vpack.c.bf16 %v300_v62, %v285_v61  ;;  %v3255_v61 = vld [vmem:[#allocation5 + $0x534] ss:$8 sps:$4 sm:$0xff]   ;;  %v281_v62 = vld [vmem:[%s3808_s16 + $0x28] sm:$0xff] }
  0xa4   : > { %1799 = vmatpush1.bf16.msra.mxu1 %v3128_v0  ;;  %v3184_v0 = vld [vmem:[#allocation5 + $0x180] ss:$8 sps:$4 sm:$0xff]  }
  0xa5   : > { %1958 = vmatpush1.bf16.msra.mxu0 %v3129_v1  ;;  %1800 = vmatprep.subr.bf16.mxu1 %v3130_v2  ;;  %v3187_v1 = vld [vmem:[#allocation5 + $0x480] ss:$8 sps:$4 sm:$0xff]   ;;  %v3192_v2 = vld [vmem:[#allocation5 + $0x194] ss:$8 sps:$4 sm:$0xff]  }
  0xa6   : > { %1959 = vmatprep.subr.bf16.mxu0 %v3132_v3  ;;  %v3195_v3 = vld [vmem:[#allocation5 + $0x494] ss:$8 sps:$4 sm:$0xff]  }
  0xa8   : > { %1801 = vmatpush1.bf16.msra.mxu1 %v3134_v4  ;;  %v3190_v4 = vld [vmem:[#allocation5 + $0x190] ss:$8 sps:$4 sm:$0xff]  }
  0xa9   : > { %1960 = vmatpush1.bf16.msra.mxu0 %v3135_v5  ;;  %1823 = vmatprep.subr.bf16.mxu1 %v3138_v7  ;;  %v3193_v5 = vld [vmem:[#allocation5 + $0x490] ss:$8 sps:$4 sm:$0xff]   ;;  %v3201_v7 = vld [vmem:[#allocation5 + $0x4a4] ss:$8 sps:$4 sm:$0xff]  }
  0xaa   : > { %1982 = vmatprep.subr.bf16.mxu0 %v3141_v11  ;;  %v3207_v11 = vld [vmem:[#allocation5 + $0x4b4] ss:$8 sps:$4 sm:$0xff]  }
  0xab   : > { %1803 = vmatmul.mubr.bf16.vlgmr.msra.gmra.mrb[0].mxu1 %v336_v14  ;;  %v3210_v14 = vld [vmem:[#allocation5 + $0x1c4] ss:$8 sps:$4 sm:$0xff]  }
  0xac   : > { %1962 = vmatmul.mubr.bf16.vlgmr.msra.gmra.mrb[0].mxu0 %v342_v15  ;;  %1824 = vmatpush1.bf16.msra.mxu1 %v3136_v12  ;;  %v3202_v12 = vld [vmem:[#allocation5 + $0x1b0] ss:$8 sps:$4 sm:$0xff]   ;;  %v3213_v15 = vld [vmem:[#allocation5 + $0x4c4] ss:$8 sps:$4 sm:$0xff]  }
  0xad   : > { %1983 = vmatpush1.bf16.msra.mxu0 %v3139_v13  ;;  %1825 = vmatprep.subr.bf16.mxu1 %v3144_v16  ;;  %v3205_v13 = vld [vmem:[#allocation5 + $0x4b0] ss:$8 sps:$4 sm:$0xff]   ;;  %v3208_v16 = vld [vmem:[#allocation5 + $0x1c0] ss:$8 sps:$4 sm:$0xff]  }
  0xae   : > { %1984 = vmatprep.subr.bf16.mxu0 %v3147_v17  ;;  %1812 = vmatprep.mubr.bf16.mxu1 %v352_v40  ;;  %v3211_v17 = vld [vmem:[#allocation5 + $0x4c0] ss:$8 sps:$4 sm:$0xff]   ;;  %v3240_v40 = vld [vmem:[#allocation5 + $0x214] ss:$8 sps:$4 sm:$0xff]  }
  0xaf   : > { %1971 = vmatprep.mubr.bf16.mxu0 %v358_v45  ;;  %v3246_v45 = vld [vmem:[#allocation5 + $0x224] ss:$8 sps:$4 sm:$0xff]  }
  0xb0   : > { %1826 = vmatpush1.bf16.msra.mxu1 %v3142_v18  ;;  %v3216_v18 = vld [vmem:[#allocation5 + $0x1d4] ss:$8 sps:$4 sm:$0xff]  }
  0xb1   : > { %1985 = vmatpush1.bf16.msra.mxu0 %v3145_v19  ;;  %1827 = vmatprep.subr.bf16.mxu1 %v3150_v20  ;;  %v3219_v19 = vld [vmem:[#allocation5 + $0x4d4] ss:$8 sps:$4 sm:$0xff]   ;;  %v3214_v20 = vld [vmem:[#allocation5 + $0x1d0] ss:$8 sps:$4 sm:$0xff]  }
  0xb2   : > { %1986 = vmatprep.subr.bf16.mxu0 %v3153_v21  ;;  %v3217_v21 = vld [vmem:[#allocation5 + $0x4d0] ss:$8 sps:$4 sm:$0xff]  }
  0xb3   : > { %1813 = vmatmul.mubr.bf16.gmra.mrb[4].mxu1 %v351_v51  ;;  %v315_v51 = vld [vmem:[%s3808_s16 + $0x138] sm:$0xff] }
  0xb4   : > { %1828 = vmatpush1.bf16.msra.mxu1 %v3148_v22  ;;  %1972 = vmatmul.mubr.bf16.gmra.mrb[4].mxu0 %v357_v52  ;;  %v3222_v22 = vld [vmem:[#allocation5 + $0x1e4] ss:$8 sps:$4 sm:$0xff]   ;;  %v330_v52 = vld [vmem:[%s3808_s16 + $0x1b0] sm:$0xff] }
  0xb5   : > { %1987 = vmatpush1.bf16.msra.mxu0 %v3151_v23  ;;  %1829 = vmatprep.subr.bf16.mxu1 %v3156_v24  ;;  %v3225_v23 = vld [vmem:[#allocation5 + $0x4e4] ss:$8 sps:$4 sm:$0xff]   ;;  %v3220_v24 = vld [vmem:[#allocation5 + $0x1e0] ss:$8 sps:$4 sm:$0xff]  }
  0xb6   : > { %1988 = vmatprep.subr.bf16.mxu0 %v3159_v25  ;;  %1855 = vmatprep.mubr.bf16.mxu1 %v339_v60  ;;  %v3223_v25 = vld [vmem:[#allocation5 + $0x4e0] ss:$8 sps:$4 sm:$0xff]  }
  0xb7   : > { %2014 = vmatprep.mubr.bf16.mxu0 %v345_v63  ;;  %v3250_v63 = vld [vmem:[#allocation5 + $0x230] ss:$8 sps:$4 sm:$0xff]  }
  0xb8   : > { %1830 = vmatpush1.bf16.msra.mxu1 %v3154_v26  ;;  %v3228_v26 = vld [vmem:[#allocation5 + $0x1f4] ss:$8 sps:$4 sm:$0xff]  }
  0xb9   : > { %1989 = vmatpush1.bf16.msra.mxu0 %v3157_v27  ;;  %1831 = vmatprep.subr.bf16.mxu1 %v3162_v28  ;;  %v3231_v27 = vld [vmem:[#allocation5 + $0x4f4] ss:$8 sps:$4 sm:$0xff]   ;;  %v3226_v28 = vld [vmem:[#allocation5 + $0x1f0] ss:$8 sps:$4 sm:$0xff]  }
  0xba   : > { %1990 = vmatprep.subr.bf16.mxu0 %v3165_v29  ;;  %v3229_v29 = vld [vmem:[#allocation5 + $0x4f0] ss:$8 sps:$4 sm:$0xff]  }
  0xbc   : > { %1832 = vmatpush1.bf16.msra.mxu1 %v3160_v30  ;;  %v278_v30 = vld [vmem:[%s3808_s16 + $0x10] sm:$0xff] }
  0xbd   : > { %1991 = vmatpush1.bf16.msra.mxu0 %v3163_v31  ;;  %1833 = vmatprep.subr.bf16.mxu1 %v3168_v32  ;;  %v3234_v31 = vld [vmem:[#allocation5 + $0x204] ss:$8 sps:$4 sm:$0xff]  }
  0xbe   : > { %1992 = vmatprep.subr.bf16.mxu0 %v3171_v33  ;;  %v293_v32 = vld [vmem:[%s3808_s16 + $0x88] sm:$0xff]  ;;  %v284_v33 = vld [vmem:[%s3808_s16 + $0x40] sm:$0xff] }
  0xc0   : > { %1834 = vmatpush1.bf16.msra.mxu1 %v3166_v34  ;;  %v299_v34 = vld [vmem:[%s3808_s16 + $0xb8] sm:$0xff] }
  0xc1   : > { %1993 = vmatpush1.bf16.msra.mxu0 %v3169_v35  ;;  %1835 = vmatprep.subr.bf16.mxu1 %v3174_v38  ;;  %v3237_v35 = vld [vmem:[#allocation5 + $0x504] ss:$8 sps:$4 sm:$0xff]   ;;  %v338_v38 = vpack.c.bf16 %v293_v32, %v278_v30  ;;  %v3292_v32 = vld [vmem:[#allocation5 + $0x2a0] ss:$8 sps:$4 sm:$0xff]  }
  0xc2   : > { %1994 = vmatprep.subr.bf16.mxu0 %v3177_v39  ;;  %v344_v39 = vpack.c.bf16 %v299_v34, %v284_v33  ;;  %v3294_v30 = vld [vmem:[#allocation5 + $0x2a4] ss:$8 sps:$4 sm:$0xff]   ;;  %v3295_v33 = vld [vmem:[#allocation5 + $0x5a0] ss:$8 sps:$4 sm:$0xff]   ;;  %v3300_v34 = vld [vmem:[#allocation5 + $0x2b4] ss:$8 sps:$4 sm:$0xff]  }
  0xc4   : > { %1836 = vmatpush1.bf16.msra.mxu1 %v3172_v43  ;;  %v3241_v43 = vld [vmem:[#allocation5 + $0x510] ss:$8 sps:$4 sm:$0xff]  }
  0xc5   : > { %1995 = vmatpush1.bf16.msra.mxu0 %v3175_v44  ;;  %1837 = vmatprep.subr.bf16.mxu1 %v3180_v50  ;;  %v309_v44 = vld [vmem:[%s3808_s16 + $0x108] sm:$0xff] }
  0xc6   : > { %1996 = vmatprep.subr.bf16.mxu0 %v3183_v53  ;;  %v354_v48 = vpack.c.bf16 %v324_v46, %v309_v44  ;;  %v3249_v50 = vld [vmem:[#allocation5 + $0x524] ss:$8 sps:$4 sm:$0xff]   ;;  %v3244_v53 = vld [vmem:[#allocation5 + $0x220] ss:$8 sps:$4 sm:$0xff]   ;;  %v3310_v44 = vld [vmem:[#allocation5 + $0x2d0] ss:$8 sps:$4 sm:$0xff]  }
  0xc7   : > { %v3318_v46 = vld [vmem:[#allocation5 + $0x2e4] ss:$8 sps:$4 sm:$0xff]  }
  0xc8   : > { %1838 = vmatpush1.bf16.msra.mxu1 %v3178_v54  ;;  %v360_v54 = vpack.c.bf16 %v330_v52, %v315_v51  ;;  %v3327_v51 = vld [vmem:[#allocation5 + $0x5f4] ss:$8 sps:$4 sm:$0xff]   ;;  %v3322_v52 = vld [vmem:[#allocation5 + $0x2f0] ss:$8 sps:$4 sm:$0xff]  }
  0xc9   : > { %1997 = vmatpush1.bf16.msra.mxu0 %v3181_v55  ;;  %1839 = vmatprep.subr.bf16.mxu1 %v3186_v58  ;;  %v3247_v55 = vld [vmem:[#allocation5 + $0x520] ss:$8 sps:$4 sm:$0xff]  }
  0xca   : > { %1998 = vmatprep.subr.bf16.mxu0 %v3189_v59  ;;  %v329_v58 = vld [vmem:[%s3808_s16 + $0x1a8] sm:$0xff]  ;;  %v3252_v59 = vld [vmem:[#allocation5 + $0x234] ss:$8 sps:$4 sm:$0xff]  }
  0xcb   : > { %v359_v60 = vpack.c.bf16 %v329_v58, %v314_v57  ;;  %v301_v57 = vld [vmem:[%s3808_s16 + $0xc8] sm:$0xff] }
  0xcc   : > { %1840 = vmatpush1.bf16.msra.mxu1 %v3184_v0  ;;  %v3253_v0 = vld [vmem:[#allocation5 + $0x530] ss:$8 sps:$4 sm:$0xff]   ;;  %v3330_v58 = vld [vmem:[#allocation5 + $0x604] ss:$8 sps:$4 sm:$0xff]  }
  0xcd   : > { %1999 = vmatpush1.bf16.msra.mxu0 %v3187_v1  ;;  %1841 = vmatprep.subr.bf16.mxu1 %v3192_v2  ;;  %v296_v1 = vld [vmem:[%s3808_s16 + $0xa0] sm:$0xff] }
  0xce   : > { %2000 = vmatprep.subr.bf16.mxu0 %v3195_v3  ;;  %v341_v2 = vpack.c.bf16 %v296_v1, %v281_v62  ;;  %v287_v3 = vld [vmem:[%s3808_s16 + $0x58] sm:$0xff]  ;;  %v332_v62 = vld [vmem:[%s3808_s16 + $0x1c0] sm:$0xff] }
  0xcf   : > { %v3328_v1 = vld [vmem:[#allocation5 + $0x600] ss:$8 sps:$4 sm:$0xff]  }
  0xd0   : > { %1842 = vmatpush1.bf16.msra.mxu1 %v3190_v4  ;;  %v302_v4 = vld [vmem:[%s3808_s16 + $0xd0] sm:$0xff] }
  0xd1   : > { %2001 = vmatpush1.bf16.msra.mxu0 %v3193_v5  ;;  %1843 = vmatprep.subr.bf16.mxu1 %v3198_v6  ;;  %v3258_v5 = vld [vmem:[#allocation5 + $0x244] ss:$8 sps:$4 sm:$0xff]  }
  0xd2   : > { %2002 = vmatprep.subr.bf16.mxu0 %v3201_v7  ;;  %v3261_v6 = vld [vmem:[#allocation5 + $0x544] ss:$8 sps:$4 sm:$0xff]   ;;  %v347_v7 = vpack.c.bf16 %v302_v4, %v287_v3  ;;  %v3333_v3 = vld [vmem:[#allocation5 + $0x614] ss:$8 sps:$4 sm:$0xff]  }
  0xd4   : > { %1844 = vmatpush1.bf16.msra.mxu1 %v3196_v8  ;;  %v3256_v8 = vld [vmem:[#allocation5 + $0x240] ss:$8 sps:$4 sm:$0xff]  }
  0xd5   : > { %2003 = vmatpush1.bf16.msra.mxu0 %v3199_v9  ;;  %1845 = vmatprep.subr.bf16.mxu1 %v3204_v10  ;;  %v3259_v9 = vld [vmem:[#allocation5 + $0x540] ss:$8 sps:$4 sm:$0xff]   ;;  %v3264_v10 = vld [vmem:[#allocation5 + $0x254] ss:$8 sps:$4 sm:$0xff]  }
  0xd6   : > { %2004 = vmatprep.subr.bf16.mxu0 %v3207_v11  ;;  %v3267_v11 = vld [vmem:[#allocation5 + $0x554] ss:$8 sps:$4 sm:$0xff]  }
  0xd8   : > { %1846 = vmatpush1.bf16.msra.mxu1 %v3202_v12  ;;  %v3262_v12 = vld [vmem:[#allocation5 + $0x250] ss:$8 sps:$4 sm:$0xff]  }
  0xd9   : > { %2005 = vmatpush1.bf16.msra.mxu0 %v3205_v13  ;;  %1847 = vmatprep.subr.bf16.mxu1 %v3210_v14  ;;  %v3265_v13 = vld [vmem:[#allocation5 + $0x550] ss:$8 sps:$4 sm:$0xff]   ;;  %v3270_v14 = vld [vmem:[#allocation5 + $0x264] ss:$8 sps:$4 sm:$0xff]  }
  0xda   : > { %2006 = vmatprep.subr.bf16.mxu0 %v3213_v15  ;;  %v3273_v15 = vld [vmem:[#allocation5 + $0x564] ss:$8 sps:$4 sm:$0xff]  }
  0xdc   : > { %1848 = vmatpush1.bf16.msra.mxu1 %v3208_v16  ;;  %v3268_v16 = vld [vmem:[#allocation5 + $0x260] ss:$8 sps:$4 sm:$0xff]  }
  0xdd   : > { %2007 = vmatpush1.bf16.msra.mxu0 %v3211_v17  ;;  %1849 = vmatprep.subr.bf16.mxu1 %v3216_v18  ;;  %v3271_v17 = vld [vmem:[#allocation5 + $0x560] ss:$8 sps:$4 sm:$0xff]   ;;  %v3276_v18 = vld [vmem:[#allocation5 + $0x274] ss:$8 sps:$4 sm:$0xff]  }
  0xde   : > { %2008 = vmatprep.subr.bf16.mxu0 %v3219_v19  ;;  %v3279_v19 = vld [vmem:[#allocation5 + $0x574] ss:$8 sps:$4 sm:$0xff]  }
  0xe0   : > { %1850 = vmatpush1.bf16.msra.mxu1 %v3214_v20  ;;  %v3274_v20 = vld [vmem:[#allocation5 + $0x270] ss:$8 sps:$4 sm:$0xff]  }
  0xe1   : > { %2009 = vmatpush1.bf16.msra.mxu0 %v3217_v21  ;;  %1851 = vmatprep.subr.bf16.mxu1 %v3222_v22  ;;  %v3277_v21 = vld [vmem:[#allocation5 + $0x570] ss:$8 sps:$4 sm:$0xff]   ;;  %v3282_v22 = vld [vmem:[#allocation5 + $0x284] ss:$8 sps:$4 sm:$0xff]  }
  0xe2   : > { %2010 = vmatprep.subr.bf16.mxu0 %v3225_v23  ;;  %v3285_v23 = vld [vmem:[#allocation5 + $0x584] ss:$8 sps:$4 sm:$0xff]  }
  0xe4   : > { %1852 = vmatpush1.bf16.msra.mxu1 %v3220_v24  ;;  %v3280_v24 = vld [vmem:[#allocation5 + $0x280] ss:$8 sps:$4 sm:$0xff]  }
  0xe5   : > { %2011 = vmatpush1.bf16.msra.mxu0 %v3223_v25  ;;  %1853 = vmatprep.subr.bf16.mxu1 %v3228_v26  ;;  %v3283_v25 = vld [vmem:[#allocation5 + $0x580] ss:$8 sps:$4 sm:$0xff]   ;;  %v3288_v26 = vld [vmem:[#allocation5 + $0x294] ss:$8 sps:$4 sm:$0xff]  }
  0xe6   : > { %2012 = vmatprep.subr.bf16.mxu0 %v3231_v27  ;;  %v3291_v27 = vld [vmem:[#allocation5 + $0x594] ss:$8 sps:$4 sm:$0xff]  }
  0xe8   : > { %1854 = vmatpush1.bf16.msra.mxu1 %v3226_v28  ;;  %v3286_v28 = vld [vmem:[#allocation5 + $0x290] ss:$8 sps:$4 sm:$0xff]  }
  0xe9   : > { %2013 = vmatpush1.bf16.msra.mxu0 %v3229_v29  ;;  %1876 = vmatprep.subr.bf16.mxu1 %v3234_v31  ;;  %v3289_v29 = vld [vmem:[#allocation5 + $0x590] ss:$8 sps:$4 sm:$0xff]   ;;  %v3297_v31 = vld [vmem:[#allocation5 + $0x5a4] ss:$8 sps:$4 sm:$0xff]  }
  0xea   : > { %2035 = vmatprep.subr.bf16.mxu0 %v3237_v35  ;;  %v3303_v35 = vld [vmem:[#allocation5 + $0x5b4] ss:$8 sps:$4 sm:$0xff]  }
  0xeb   : > { %1856 = vmatmul.mubr.bf16.vlgmr.msra.gmra.mrb[0].mxu1 %v338_v38  ;;  %v3306_v38 = vld [vmem:[#allocation5 + $0x2c4] ss:$8 sps:$4 sm:$0xff]  }
  0xec   : > { %2015 = vmatmul.mubr.bf16.vlgmr.msra.gmra.mrb[0].mxu0 %v344_v39  ;;  %1877 = vmatpush1.bf16.msra.mxu1 %v3232_v36  ;;  %v3298_v36 = vld [vmem:[#allocation5 + $0x2b0] ss:$8 sps:$4 sm:$0xff]   ;;  %v3309_v39 = vld [vmem:[#allocation5 + $0x5c4] ss:$8 sps:$4 sm:$0xff]  }
  0xed   : > { %2036 = vmatpush1.bf16.msra.mxu0 %v3235_v37  ;;  %1878 = vmatprep.subr.bf16.mxu1 %v3240_v40  ;;  %v3301_v37 = vld [vmem:[#allocation5 + $0x5b0] ss:$8 sps:$4 sm:$0xff]   ;;  %v3304_v40 = vld [vmem:[#allocation5 + $0x2c0] ss:$8 sps:$4 sm:$0xff]  }
  0xee   : > { %2037 = vmatprep.subr.bf16.mxu0 %v3243_v41  ;;  %1865 = vmatprep.mubr.bf16.mxu1 %v354_v48  ;;  %v3307_v41 = vld [vmem:[#allocation5 + $0x5c0] ss:$8 sps:$4 sm:$0xff]  }
  0xef   : > { %2024 = vmatprep.mubr.bf16.mxu0 %v360_v54  ;;  %v3316_v48 = vld [vmem:[#allocation5 + $0x2e0] ss:$8 sps:$4 sm:$0xff]  }
  0xf0   : > { %1879 = vmatpush1.bf16.msra.mxu1 %v3238_v42  ;;  %v3312_v42 = vld [vmem:[#allocation5 + $0x2d4] ss:$8 sps:$4 sm:$0xff]   ;;  %v280_v54 = vld [vmem:[%s3808_s16 + $0x20] sm:$0xff] }
  0xf1   : > { %2038 = vmatpush1.bf16.msra.mxu0 %v3241_v43  ;;  %1880 = vmatprep.subr.bf16.mxu1 %v3246_v45  ;;  %v3315_v43 = vld [vmem:[#allocation5 + $0x5d4] ss:$8 sps:$4 sm:$0xff]   ;;  %v3313_v45 = vld [vmem:[#allocation5 + $0x5d0] ss:$8 sps:$4 sm:$0xff]  }
  0xf2   : > { %2039 = vmatprep.subr.bf16.mxu0 %v3249_v50  ;;  %v3324_v50 = vld [vmem:[#allocation5 + $0x2f4] ss:$8 sps:$4 sm:$0xff]  }
  0xf3   : > { %1866 = vmatmul.mubr.bf16.gmra.mrb[4].mxu1 %v353_v56  ;;  %v286_v56 = vld [vmem:[%s3808_s16 + $0x50] sm:$0xff] }
  0xf4   : > { %2025 = vmatmul.mubr.bf16.gmra.mrb[4].mxu0 %v359_v60  ;;  %1881 = vmatpush1.bf16.msra.mxu1 %v3244_v53  ;;  %v3325_v53 = vld [vmem:[#allocation5 + $0x5f0] ss:$8 sps:$4 sm:$0xff]  }
  0xf5   : > { %2040 = vmatpush1.bf16.msra.mxu0 %v3247_v55  ;;  %1882 = vmatprep.subr.bf16.mxu1 %v3252_v59  ;;  %v295_v55 = vld [vmem:[%s3808_s16 + $0x98] sm:$0xff]  ;;  %v326_v60 = vld [vmem:[%s3808_s16 + $0x190] sm:$0xff] }
  0xf6   : > { %2041 = vmatprep.subr.bf16.mxu0 %v3255_v61  ;;  %1908 = vmatprep.mubr.bf16.mxu1 %v341_v2  ;;  %v311_v59 = vld [vmem:[%s3808_s16 + $0x118] sm:$0xff]  ;;  %v317_v61 = vld [vmem:[%s3808_s16 + $0x148] sm:$0xff] }
  0xf7   : > { %2067 = vmatprep.mubr.bf16.mxu0 %v347_v7  ;;  %v356_v2 = vpack.c.bf16 %v326_v60, %v311_v59  ;;  %v362_v4 = vpack.c.bf16 %v332_v62, %v317_v61  ;;  %v325_v7 = vld [vmem:[%s3808_s16 + $0x188] sm:$0xff]  ;;  %v3598_v59 = vmov 0   ;;  %v290_v60 = vld [vmem:[%s3808_s16 + $0x70] sm:$0xff] }
  0xf8   : > { %1883 = vmatpush1.bf16.msra.mxu1 %v3250_v63  ;;  %v340_v63 = vpack.c.bf16 %v295_v55, %v280_v54  ;;  %v333_v54 = vld [vmem:[%s3808_s16 + $0x1c8] sm:$0xff] }
  0xf9   : > { %2042 = vmatpush1.bf16.msra.mxu0 %v3253_v0  ;;  %1884 = vmatprep.subr.bf16.mxu1 %v3258_v5  ;;  %v346_v0 = vpack.c.bf16 %v301_v57, %v286_v56  ;;  %v3331_v5 = vld [vmem:[#allocation5 + $0x610] ss:$8 sps:$4 sm:$0xff]   ;;  %v3382_v55 = vld [vmem:[#allocation5 + $0x724] ss:$8 sps:$4 sm:$0x3f]  }
  0xfa   : > { %2043 = vmatprep.subr.bf16.mxu0 %v3261_v6  ;;  %v310_v6 = vld [vmem:[%s3808_s16 + $0x110] sm:$0xff]  ;;  %v3384_v56 = vld [vmem:[#allocation5 + $0x720] ss:$8 sps:$4 sm:$0x3f]  }
  0xfb   : > { %v305_v61 = vld [vmem:[%s3808_s16 + $0xe8] sm:$0xff] }
  0xfc   : > { %1885 = vmatpush1.bf16.msra.mxu1 %v3256_v8  ;;  %v316_v8 = vld [vmem:[%s3808_s16 + $0x140] sm:$0xff]  ;;  %v350_v62 = vpack.c.bf16 %v305_v61, %v290_v60 }
  0xfd   : > { %2044 = vmatpush1.bf16.msra.mxu0 %v3259_v9  ;;  %1886 = vmatprep.subr.bf16.mxu1 %v3264_v10  ;;  %v331_v9 = vld [vmem:[%s3808_s16 + $0x1b8] sm:$0xff]  ;;  %v3336_v10 = vld [vmem:[#allocation5 + $0x624] ss:$8 sps:$4 sm:$0xff]  }
  0xfe   : > { %2045 = vmatprep.subr.bf16.mxu0 %v3267_v11  ;;  %v289_v11 = vld [vmem:[%s3808_s16 + $0x68] sm:$0xff] }
 0x100   : > { %1887 = vmatpush1.bf16.msra.mxu1 %v3262_v12  ;;  %v304_v12 = vld [vmem:[%s3808_s16 + $0xe0] sm:$0xff] }
 0x101   : > { %2046 = vmatpush1.bf16.msra.mxu0 %v3265_v13  ;;  %1888 = vmatprep.subr.bf16.mxu1 %v3270_v14  ;;  %v355_v13 = vpack.c.bf16 %v325_v7, %v310_v6  ;;  %v361_v14 = vpack.c.bf16 %v331_v9, %v316_v8  ;;  %v3393_v6 = vld [vmem:[#allocation7 + $0x24] ss:$8 sps:$4 sm:$0xff]   ;;  %v3391_v7 = vld [vmem:[#allocation7 + $0x20] ss:$8 sps:$4 sm:$0xff]   ;;  %v3396_v8 = vld [vmem:[#allocation7 + $0x34] ss:$8 sps:$4 sm:$0xff]  }
 0x102   : > { %2047 = vmatprep.subr.bf16.mxu0 %v3273_v15  ;;  %v3334_v15 = vld [vmem:[#allocation5 + $0x620] ss:$8 sps:$4 sm:$0xff]  }
 0x103   : > { %v3394_v9 = vld [vmem:[#allocation7 + $0x30] ss:$8 sps:$4 sm:$0xff]  }
 0x104   : > { %1889 = vmatpush1.bf16.msra.mxu1 %v3268_v16  ;;  %v349_v16 = vpack.c.bf16 %v304_v12, %v289_v11  ;;  %v3397_v11 = vld [vmem:[#allocation7 + $0x40] ss:$8 sps:$4 sm:$0xff]   ;;  %v3402_v12 = vld [vmem:[#allocation7 + $0x54] ss:$8 sps:$4 sm:$0xff]  }
 0x105   : > { %2048 = vmatpush1.bf16.msra.mxu0 %v3271_v17  ;;  %1890 = vmatprep.subr.bf16.mxu1 %v3276_v18  ;;  %v3339_v17 = vld [vmem:[#allocation5 + $0x634] ss:$8 sps:$4 sm:$0xff]   ;;  %v3337_v18 = vld [vmem:[#allocation5 + $0x630] ss:$8 sps:$4 sm:$0xff]  }
 0x106   : > { %2049 = vmatprep.subr.bf16.mxu0 %v3279_v19  ;;  %v3342_v19 = vld [vmem:[#allocation5 + $0x644] ss:$8 sps:$4 sm:$0xff]  }
 0x108   : > { %1891 = vmatpush1.bf16.msra.mxu1 %v3274_v20  ;;  %v3340_v20 = vld [vmem:[#allocation5 + $0x640] ss:$8 sps:$4 sm:$0xff]  }
 0x109   : > { %2050 = vmatpush1.bf16.msra.mxu0 %v3277_v21  ;;  %1892 = vmatprep.subr.bf16.mxu1 %v3282_v22  ;;  %v3345_v21 = vld [vmem:[#allocation5 + $0x654] ss:$8 sps:$4 sm:$0xff]   ;;  %v3343_v22 = vld [vmem:[#allocation5 + $0x650] ss:$8 sps:$4 sm:$0xff]  }
 0x10a   : > { %2051 = vmatprep.subr.bf16.mxu0 %v3285_v23  ;;  %v3348_v23 = vld [vmem:[#allocation5 + $0x664] ss:$8 sps:$4 sm:$0xff]  }
 0x10c   : > { %1893 = vmatpush1.bf16.msra.mxu1 %v3280_v24  ;;  %v3346_v24 = vld [vmem:[#allocation5 + $0x660] ss:$8 sps:$4 sm:$0xff]  }
 0x10d   : > { %2052 = vmatpush1.bf16.msra.mxu0 %v3283_v25  ;;  %1894 = vmatprep.subr.bf16.mxu1 %v3288_v26  ;;  %v3351_v25 = vld [vmem:[#allocation5 + $0x674] ss:$8 sps:$4 sm:$0xff]   ;;  %v3349_v26 = vld [vmem:[#allocation5 + $0x670] ss:$8 sps:$4 sm:$0xff]  }
 0x10e   : > { %2053 = vmatprep.subr.bf16.mxu0 %v3291_v27  ;;  %v3354_v27 = vld [vmem:[#allocation5 + $0x684] ss:$8 sps:$4 sm:$0xff]  }
 0x110   : > { %1895 = vmatpush1.bf16.msra.mxu1 %v3286_v28  ;;  %v3352_v28 = vld [vmem:[#allocation5 + $0x680] ss:$8 sps:$4 sm:$0xff]  }
 0x111   : > { %2054 = vmatpush1.bf16.msra.mxu0 %v3289_v29  ;;  %1896 = vmatprep.subr.bf16.mxu1 %v3294_v30  ;;  %v3357_v29 = vld [vmem:[#allocation5 + $0x694] ss:$8 sps:$4 sm:$0xff]   ;;  %v3355_v30 = vld [vmem:[#allocation5 + $0x690] ss:$8 sps:$4 sm:$0xff]  }
 0x112   : > { %2055 = vmatprep.subr.bf16.mxu0 %v3297_v31  ;;  %v3360_v31 = vld [vmem:[#allocation5 + $0x6a4] ss:$8 sps:$4 sm:$0xff]  }
 0x114   : > { %1897 = vmatpush1.bf16.msra.mxu1 %v3292_v32  ;;  %v3358_v32 = vld [vmem:[#allocation5 + $0x6a0] ss:$8 sps:$4 sm:$0xff]  }
 0x115   : > { %2056 = vmatpush1.bf16.msra.mxu0 %v3295_v33  ;;  %1898 = vmatprep.subr.bf16.mxu1 %v3300_v34  ;;  %v3363_v33 = vld [vmem:[#allocation5 + $0x6b4] ss:$8 sps:$4 sm:$0xff]   ;;  %v3361_v34 = vld [vmem:[#allocation5 + $0x6b0] ss:$8 sps:$4 sm:$0xff]  }
 0x116   : > { %2057 = vmatprep.subr.bf16.mxu0 %v3303_v35  ;;  %v3366_v35 = vld [vmem:[#allocation5 + $0x6c4] ss:$8 sps:$4 sm:$0xff]  }
 0x118   : > { %1899 = vmatpush1.bf16.msra.mxu1 %v3298_v36  ;;  %v3364_v36 = vld [vmem:[#allocation5 + $0x6c0] ss:$8 sps:$4 sm:$0xff]  }
 0x119   : > { %2058 = vmatpush1.bf16.msra.mxu0 %v3301_v37  ;;  %1900 = vmatprep.subr.bf16.mxu1 %v3306_v38  ;;  %v3369_v37 = vld [vmem:[#allocation5 + $0x6d4] ss:$8 sps:$4 sm:$0xff]   ;;  %v3367_v38 = vld [vmem:[#allocation5 + $0x6d0] ss:$8 sps:$4 sm:$0xff]  }
 0x11a   : > { %2059 = vmatprep.subr.bf16.mxu0 %v3309_v39  ;;  %v3372_v39 = vld [vmem:[#allocation5 + $0x6e4] ss:$8 sps:$4 sm:$0xff]  }
 0x11c   : > { %1901 = vmatpush1.bf16.msra.mxu1 %v3304_v40  ;;  %v3370_v40 = vld [vmem:[#allocation5 + $0x6e0] ss:$8 sps:$4 sm:$0xff]  }
 0x11d   : > { %2060 = vmatpush1.bf16.msra.mxu0 %v3307_v41  ;;  %1902 = vmatprep.subr.bf16.mxu1 %v3312_v42  ;;  %v3375_v41 = vld [vmem:[#allocation5 + $0x6f4] ss:$8 sps:$4 sm:$0xff]   ;;  %v3373_v42 = vld [vmem:[#allocation5 + $0x6f0] ss:$8 sps:$4 sm:$0xff]  }
 0x11e   : > { %2061 = vmatprep.subr.bf16.mxu0 %v3315_v43  ;;  %v288_v43 = vld [vmem:[%s3808_s16 + $0x60] sm:$0xff] }
 0x120   : > { %1903 = vmatpush1.bf16.msra.mxu1 %v3310_v44  ;;  %v303_v44 = vld [vmem:[%s3808_s16 + $0xd8] sm:$0xff] }
 0x121   : > { %2062 = vmatpush1.bf16.msra.mxu0 %v3313_v45  ;;  %1904 = vmatprep.subr.bf16.mxu1 %v3318_v46  ;;  %v3378_v45 = vld [vmem:[#allocation5 + $0x704] ss:$8 sps:$4 sm:$0xff]   ;;  %v319_v46 = vld [vmem:[%s3808_s16 + $0x158] sm:$0xff] }
 0x122   : > { %2063 = vmatprep.subr.bf16.mxu0 %v3321_v47  ;;  %v334_v47 = vld [vmem:[%s3808_s16 + $0x1d0] sm:$0xff] }
 0x124   : > { %1905 = vmatpush1.bf16.msra.mxu1 %v3316_v48  ;;  %v348_v48 = vpack.c.bf16 %v303_v44, %v288_v43 }
 0x125   : > { %2064 = vmatpush1.bf16.msra.mxu0 %v3319_v49  ;;  %1906 = vmatprep.subr.bf16.mxu1 %v3324_v50  ;;  %v3376_v49 = vld [vmem:[#allocation5 + $0x700] ss:$8 sps:$4 sm:$0xff]   ;;  %v364_v50 = vpack.c.bf16 %v334_v47, %v319_v46 }
 0x126   : > { %2065 = vmatprep.subr.bf16.mxu0 %v3327_v51  ;;  %v3381_v51 = vld [vmem:[#allocation5 + $0x714] ss:$8 sps:$4 sm:$0xff]  }
 0x128   : > { %1907 = vmatpush1.bf16.msra.mxu1 %v3322_v52  ;;  %v3379_v52 = vld [vmem:[#allocation5 + $0x710] ss:$8 sps:$4 sm:$0xff]  }
 0x129   : > { %2066 = vmatpush1.bf16.msra.mxu0 %v3325_v53  ;;  %v318_v53 = vld [vmem:[%s3808_s16 + $0x150] sm:$0xff] }
 0x12a   : > { %2088 = vmatprep.subr.bf16.mxu0 %v3330_v58  ;;  %v363_v57 = vpack.c.bf16 %v333_v54, %v318_v53  ;;  %v1765_v58 = vsel %vm1763_vm0, %v3384_v56, 0 }
 0x12b   : > { %1909 = vmatmul.mubr.bf16.vlgmr.msra.gmra.mrb[0].mxu1 %v340_v63  ;;  %v320_v63 = vld [vmem:[%s3808_s16 + $0x160] sm:$0xff] }
 0x12c   : > { %2068 = vmatmul.mubr.bf16.vlgmr.msra.gmra.mrb[0].mxu0 %v346_v0  ;;  %1918 = vmatprep.mubr.bf16.mxu1 %v356_v2  ;;  %v335_v0 = vld [vmem:[%s3808_s16 + $0x1d8] sm:$0xff]  ;;  %s3525_s16 = scalar_lea.vmem %s3524_s6, 1024 }
 0x12d   : > { %2089 = vmatpush1.bf16.msra.mxu0 %v3328_v1  ;;  %2077 = vmatprep.mubr.bf16.mxu0 %v362_v4  ;;  %v365_v1 = vpack.c.bf16 %v335_v0, %v320_v63  ;;  %v3385_v2 = vld [vmem:[#allocation7] ss:$8 sps:$4 sm:$0xff]   ;;  %v3390_v4 = vld [vmem:[#allocation7 + $0x14] ss:$8 sps:$4 sm:$0xff]   ;;  %p3527_p9 = scmp.lt.s32.totalorder %s3525_s16, %s3519_s17 }
 0x12e   : > { %2090 = vmatprep.subr.bf16.mxu0 %v3333_v3  ;;  %v3387_v3 = vld [vmem:[#allocation7 + $0x4] ss:$8 sps:$4 sm:$0xff]  }
 0x12f   : > { %2410 = vmatprep.subr.bf16.mxu1 %v3387_v3  ;;  %p3528_p12 = por %p3527_p9, %p3526_p7 }
 0x130   : > { %2411 = vmatpush1.bf16.msra.mxu1 %v3385_v2 }
 0x131   : > { %2091 = vmatpush1.bf16.msra.mxu0 %v3331_v5  ;;  %v3388_v5 = vld [vmem:[#allocation7 + $0x10] ss:$8 sps:$4 sm:$0xff]   ;;  %2412 = vmatprep.subr.bf16.mxu1 %v3390_v4  ;;  %p3529_p2 = pnand %p3528_p12, %p3522_p3 }
 0x132   : > { %2092 = vmatprep.subr.bf16.mxu0 %v3336_v10  ;;  %v3399_v10 = vld [vmem:[#allocation7 + $0x44] ss:$8 sps:$4 sm:$0xff]  }
 0x133   : > { %1919 = vmatmul.mubr.bf16.gmra.mrb[4].mxu1 %v355_v13  ;;  %v3400_v13 = vld [vmem:[#allocation7 + $0x50] ss:$8 sps:$4 sm:$0xff]  }
 0x134   : > { %2078 = vmatmul.mubr.bf16.gmra.mrb[4].mxu0 %v361_v14  ;;  %2413 = vmatpush1.bf16.msra.mxu1 %v3388_v5  ;;  %v3405_v14 = vld [vmem:[#allocation7 + $0x64] ss:$8 sps:$4 sm:$0xff]  }
 0x135   : > { %2093 = vmatpush1.bf16.msra.mxu0 %v3334_v15  ;;  %2120 = vmatprep.mubr.bf16.mxu0 %v349_v16  ;;  %v3403_v15 = vld [vmem:[#allocation7 + $0x60] ss:$8 sps:$4 sm:$0xff]   ;;  %v3408_v16 = vld [vmem:[#allocation7 + $0x74] ss:$8 sps:$4 sm:$0xff]  }
 0x136   : > { %2094 = vmatprep.subr.bf16.mxu0 %v3339_v17  ;;  %2414 = vmatprep.subr.bf16.mxu1 %v3393_v6  ;;  %v3406_v17 = vld [vmem:[#allocation7 + $0x70] ss:$8 sps:$4 sm:$0xff]  }
 0x138   : > { %2415 = vmatpush1.bf16.msra.mxu1 %v3391_v7 }
 0x139   : > { %2095 = vmatpush1.bf16.msra.mxu0 %v3337_v18  ;;  %2416 = vmatprep.subr.bf16.mxu1 %v3396_v8  ;;  %v3411_v18 = vld [vmem:[#allocation7 + $0x84] ss:$8 sps:$4 sm:$0xff]  }
 0x13a   : > { %2096 = vmatprep.subr.bf16.mxu0 %v3342_v19  ;;  %v3409_v19 = vld [vmem:[#allocation7 + $0x80] ss:$8 sps:$4 sm:$0xff]  }
 0x13c   : > { %2417 = vmatpush1.bf16.msra.mxu1 %v3394_v9 }
 0x13d   : > { %2097 = vmatpush1.bf16.msra.mxu0 %v3340_v20  ;;  %2418 = vmatprep.subr.bf16.mxu1 %v3399_v10  ;;  %v3414_v20 = vld [vmem:[#allocation7 + $0x94] ss:$8 sps:$4 sm:$0xff]  }
 0x13e   : > { %2098 = vmatprep.subr.bf16.mxu0 %v3345_v21  ;;  %v3412_v21 = vld [vmem:[#allocation7 + $0x90] ss:$8 sps:$4 sm:$0xff]  }
 0x140   : > { %2419 = vmatpush1.bf16.msra.mxu1 %v3397_v11 }
 0x141   : > { %2099 = vmatpush1.bf16.msra.mxu0 %v3343_v22  ;;  %2420 = vmatprep.subr.bf16.mxu1 %v3402_v12  ;;  %v3417_v22 = vld [vmem:[#allocation7 + $0xa4] ss:$8 sps:$4 sm:$0xff]  }
 0x142   : > { %2100 = vmatprep.subr.bf16.mxu0 %v3348_v23  ;;  %v3415_v23 = vld [vmem:[#allocation7 + $0xa0] ss:$8 sps:$4 sm:$0xff]  }
 0x144   : > { %2421 = vmatpush1.bf16.msra.mxu1 %v3400_v13 }
 0x145   : > { %2101 = vmatpush1.bf16.msra.mxu0 %v3346_v24  ;;  %2422 = vmatprep.subr.bf16.mxu1 %v3405_v14  ;;  %v3420_v24 = vld [vmem:[#allocation7 + $0xb4] ss:$8 sps:$4 sm:$0xff]  }
 0x146   : > { %2102 = vmatprep.subr.bf16.mxu0 %v3351_v25  ;;  %v3418_v25 = vld [vmem:[#allocation7 + $0xb0] ss:$8 sps:$4 sm:$0xff]  }
 0x148   : > { %2423 = vmatpush1.bf16.msra.mxu1 %v3403_v15 }
 0x149   : > { %2103 = vmatpush1.bf16.msra.mxu0 %v3349_v26  ;;  %2424 = vmatprep.subr.bf16.mxu1 %v3408_v16  ;;  %v3423_v26 = vld [vmem:[#allocation7 + $0xc4] ss:$8 sps:$4 sm:$0xff]  }
 0x14a   : > { %2104 = vmatprep.subr.bf16.mxu0 %v3354_v27  ;;  %v3421_v27 = vld [vmem:[#allocation7 + $0xc0] ss:$8 sps:$4 sm:$0xff]  }
 0x14c   : > { %2425 = vmatpush1.bf16.msra.mxu1 %v3406_v17 }
 0x14d   : > { %2105 = vmatpush1.bf16.msra.mxu0 %v3352_v28  ;;  %2426 = vmatprep.subr.bf16.mxu1 %v3411_v18  ;;  %v3426_v28 = vld [vmem:[#allocation7 + $0xd4] ss:$8 sps:$4 sm:$0xff]  }
 0x14e   : > { %2106 = vmatprep.subr.bf16.mxu0 %v3357_v29  ;;  %v3424_v29 = vld [vmem:[#allocation7 + $0xd0] ss:$8 sps:$4 sm:$0xff]  }
 0x150   : > { %2427 = vmatpush1.bf16.msra.mxu1 %v3409_v19 }
 0x151   : > { %2107 = vmatpush1.bf16.msra.mxu0 %v3355_v30  ;;  %2428 = vmatprep.subr.bf16.mxu1 %v3414_v20  ;;  %v3429_v30 = vld [vmem:[#allocation7 + $0xe4] ss:$8 sps:$4 sm:$0xff]  }
 0x152   : > { %2108 = vmatprep.subr.bf16.mxu0 %v3360_v31  ;;  %v3427_v31 = vld [vmem:[#allocation7 + $0xe0] ss:$8 sps:$4 sm:$0xff]  }
 0x154   : > { %2429 = vmatpush1.bf16.msra.mxu1 %v3412_v21  ;;  %v2238_v21 = vld [vmem:[%s3939_s4] sm:$0x3] }
 0x155   : > { %2109 = vmatpush1.bf16.msra.mxu0 %v3358_v32  ;;  %2430 = vmatprep.subr.bf16.mxu1 %v3417_v22  ;;  %v3432_v32 = vld [vmem:[#allocation7 + $0xf4] ss:$8 sps:$4 sm:$0xff]  }
 0x156   : > { %2110 = vmatprep.subr.bf16.mxu0 %v3363_v33  ;;  %v3430_v33 = vld [vmem:[#allocation7 + $0xf0] ss:$8 sps:$4 sm:$0xff]  }
 0x158   : > { %2431 = vmatpush1.bf16.msra.mxu1 %v3415_v23 }
 0x159   : > { %2111 = vmatpush1.bf16.msra.mxu0 %v3361_v34  ;;  %2432 = vmatprep.subr.bf16.mxu1 %v3420_v24 }
 0x15a   : > { %2112 = vmatprep.subr.bf16.mxu0 %v3366_v35 }
 0x15c   : > { %2433 = vmatpush1.bf16.msra.mxu1 %v3418_v25 }
 0x15d   : > { %2113 = vmatpush1.bf16.msra.mxu0 %v3364_v36  ;;  %2434 = vmatprep.subr.bf16.mxu1 %v3423_v26 }
 0x15e   : > { %2114 = vmatprep.subr.bf16.mxu0 %v3369_v37 }
 0x160   : > { %2435 = vmatpush1.bf16.msra.mxu1 %v3421_v27 }
 0x161   : > { %2115 = vmatpush1.bf16.msra.mxu0 %v3367_v38  ;;  %2436 = vmatprep.subr.bf16.mxu1 %v3426_v28 }
 0x162   : > { %2116 = vmatprep.subr.bf16.mxu0 %v3372_v39 }
 0x164   : > { %2437 = vmatpush1.bf16.msra.mxu1 %v3424_v29 }
 0x165   : > { %2117 = vmatpush1.bf16.msra.mxu0 %v3370_v40  ;;  %2438 = vmatprep.subr.bf16.mxu1 %v3429_v30 }
 0x166   : > { %2118 = vmatprep.subr.bf16.mxu0 %v3375_v41 }
 0x168   : > { %2439 = vmatpush1.bf16.msra.mxu1 %v3427_v31 }
 0x169   : > { %2119 = vmatpush1.bf16.msra.mxu0 %v3373_v42  ;;  %2440 = vmatprep.subr.bf16.mxu1 %v3432_v32  ;;  %v598_v42 = vlaneseq }
 0x16a   : > { %2141 = vmatprep.subr.bf16.mxu0 %v3378_v45  ;;  %v596_v45 = vld [vmem:[%s3937_s2] sm:$0x3] }
 0x16b   : > { %v599_v43 = vshrl.u32 %v598_v42, 7 }
 0x16c   : > { %2121 = vmatmul.mubr.bf16.vlgmr.msra.gmra.mrb[0].mxu0 %v348_v48  ;;  %2441 = vmatpush1.bf16.msra.mxu1 %v3430_v33 }
 0x16d   : > { %2142 = vmatpush1.bf16.msra.mxu0 %v3376_v49  ;;  %2130 = vmatprep.mubr.bf16.mxu0 %v364_v50  ;;  %v600_v44 = vsub.s32 0, %v599_v43  ;;  %v604_v46 = vsub.s32 1, %v599_v43 }
 0x16e   : > { %2143 = vmatprep.subr.bf16.mxu0 %v3381_v51 }
 0x16f   : > { %v601_v47 = vrot.slane %v596_v45, %v600_v44  ;;  %v605_v48 = vrot.slane %v596_v45, %v604_v46  ;;  %v2243_v22 = vrot.slane %v2238_v21, %v600_v44  ;;  %v2247_v23 = vrot.slane %v2238_v21, %v604_v46 }
 0x171   : > { %2144 = vmatpush1.bf16.msra.mxu0 %v3379_v52 }
 0x172   : > { %2848 = vmatprep.subr.msk.bf16.mxu0 %vm1763_vm0, %v3382_v55 }
 0x174   : > { %2131 = vmatmul.mubr.bf16.gmra.mrb[4].mxu0 %v363_v57 }
 0x175   : > { %2146 = vmatpush1.bf16.msra.mxu0 %v1765_v58  ;;  %2173 = vmatprep.mubr.bf16.mxu0 %v3598_v59 }
 0x17c   : > { %2849 = vmatmul.mubr.msk.bf16.vlgmr.msra.gmra.mrb[0].mxu0 %vm1756_vm1, %v350_v62 }
 0x17d   : > { %2183 = vmatprep.mubr.bf16.mxu0 %v3598_v59 }
 0x184   : > { %2850 = vmatmul.mubr.msk.bf16.gmra.mrb[4].mxu0 %vm1756_vm1, %v365_v1 }
 0x1fe   : > { %v1910_v34 = vpop.f32.mrb[0].mxu1 }
 0x1ff   : > { %v1912_v35 = vpop.f32.mrb[1].mxu1  ;;  %v2899_v49 = vadd.f32 %v1910_v34, %v601_v47 }
 0x200   : > { %v1914_v36 = vpop.f32.mrb[2].mxu1  ;;  %v2901_v50 = vadd.f32 %v1912_v35, %v605_v48 }
 0x201   : > { %v1916_v37 = vpop.f32.mrb[3].mxu1  ;;  %v2903_v52 = vadd.f32 %v1914_v36, %v601_v47 }
 0x202   : > { %v2905_v55 = vadd.f32 %v1916_v37, %v605_v48 }
 0x206   : > { %v1920_v38 = vpop.f32.mrb[4].mxu1 }
 0x207   : > { %v1922_v39 = vpop.f32.mrb[5].mxu1  ;;  %v2907_v1 = vadd.f32 %v1920_v38, %v601_v47 }
 0x208   : > { %v1924_v40 = vpop.f32.mrb[6].mxu1  ;;  %v2909_v3 = vadd.f32 %v1922_v39, %v605_v48 }
 0x209   : > { %v1926_v41 = vpop.f32.mrb[7].mxu1  ;;  %v2911_v6 = vadd.f32 %v1924_v40, %v601_v47 }
 0x20a   : > { %v2913_v9 = vadd.f32 %v1926_v41, %v605_v48 }
 0x24f   : > { %v2175_v51 = vpop.f32.mrb[0].mxu0 }
 0x250   : > { %v2900_v53 = vadd.f32 %v2899_v49, %v2175_v51  ;;  %v2177_v54 = vpop.f32.mrb[1].mxu0 }
 0x251   : > { %v2902_v56 = vadd.f32 %v2901_v50, %v2177_v54  ;;  %v2179_v57 = vpop.f32.mrb[2].mxu0 }
 0x252   : > { %v2904_v58 = vadd.f32 %v2903_v52, %v2179_v57  ;;  %v2181_v59 = vpop.f32.mrb[3].mxu0  ;;  %v2194_v61 = vmax.f32 %v2900_v53, 0.0 }
 0x253   : > { %v2906_v60 = vadd.f32 %v2905_v55, %v2181_v59  ;;  %v2195_v63 = vmax.f32 %v2902_v56, 0.0 }
 0x254   : > { %v2196_v62 = vmax.f32 %v2904_v58, 0.0 }
 0x255   : > { %v2197_v0 = vmax.f32 %v2906_v60, 0.0 }
 0x256   : > { %v2202_v2 = vpack.c.bf16 %v2196_v62, %v2194_v61 }
 0x257   : > { %v2203_v4 = vpack.c.bf16 %v2197_v0, %v2195_v63  ;;  %v2185_v5 = vpop.f32.mrb[4].mxu0 }
 0x258   : > { %v2908_v7 = vadd.f32 %v2907_v1, %v2185_v5  ;;  %v2187_v8 = vpop.f32.mrb[5].mxu0 }
 0x259   : > { %v2910_v10 = vadd.f32 %v2909_v3, %v2187_v8  ;;  %v2189_v11 = vpop.f32.mrb[6].mxu0  ;;  %2442 = vmatprep.mubr.bf16.mxu1 %v2203_v4 }
 0x25a   : > { %v2912_v12 = vadd.f32 %v2911_v6, %v2189_v11  ;;  %v2191_v13 = vpop.f32.mrb[7].mxu0  ;;  %2443 = vmatmul.mubr.bf16.vlgmr.msra.gmra.mrb[8].mxu1 %v2202_v2  ;;  %v2198_v15 = vmax.f32 %v2908_v7, 0.0 }
 0x25b   : > { %v2914_v14 = vadd.f32 %v2913_v9, %v2191_v13  ;;  %v2199_v17 = vmax.f32 %v2910_v10, 0.0 }
 0x25c   : > { %v2200_v16 = vmax.f32 %v2912_v12, 0.0 }
 0x25d   : > { %v2201_v18 = vmax.f32 %v2914_v14, 0.0 }
 0x25e   : > { %v2204_v19 = vpack.c.bf16 %v2200_v16, %v2198_v15 }
 0x25f   : > { %v2205_v20 = vpack.c.bf16 %v2201_v18, %v2199_v17 }
 0x261   : > { %2452 = vmatprep.mubr.bf16.mxu1 %v2205_v20 }
 0x262   : > { %2453 = vmatmul.mubr.bf16.gmra.mrb[12].mxu1 %v2204_v19 }
 0x32d   : > { %v2444_v24 = vpop.f32.mrb[8].mxu1 }
 0x32e   : > { %v2445_v25 = vadd.f32 %v2444_v24, %v2243_v22  ;;  %v2446_v26 = vpop.f32.mrb[9].mxu1 }
 0x32f   : > { %v2447_v27 = vadd.f32 %v2446_v26, %v2247_v23  ;;  %v2448_v28 = vpop.f32.mrb[10].mxu1 }
 0x330   : > { %v2463_v29 = vmax.f32 %v2445_v25, 0.0  ;;  %v2449_v30 = vadd.f32 %v2448_v28, %v2243_v22  ;;  %v2450_v31 = vpop.f32.mrb[11].mxu1 }
 0x331   : > { %v2464_v32 = vmax.f32 %v2447_v27, 0.0  ;;  %v2451_v33 = vadd.f32 %v2450_v31, %v2247_v23 }
 0x332   : > { %v2465_v34 = vmax.f32 %v2449_v30, 0.0 }
 0x333   : > { %v2893_v35 = vpack.c.bf16 %v2464_v32, %v2463_v29  ;;  %v2466_v36 = vmax.f32 %v2451_v33, 0.0 }
 0x335   : > { %2495 = vst [vmem:[%s272_s28] sm:$0xff] %v2893_v35  ;;  %v2894_v37 = vpack.c.bf16 %v2466_v36, %v2465_v34  ;;  %v2454_v38 = vpop.f32.mrb[12].mxu1 }
 0x336   : > { %v2455_v39 = vadd.f32 %v2454_v38, %v2243_v22  ;;  %v2456_v40 = vpop.f32.mrb[13].mxu1 }
 0x337   : > { %2496 = vst [vmem:[%s272_s28 + $0x8] sm:$0xff] %v2894_v37  ;;  %v2457_v41 = vadd.f32 %v2456_v40, %v2247_v23  ;;  %v2458_v42 = vpop.f32.mrb[14].mxu1 }
 0x338   : > { %v2467_v43 = vmax.f32 %v2455_v39, 0.0  ;;  %v2459_v44 = vadd.f32 %v2458_v42, %v2243_v22  ;;  %v2460_v45 = vpop.f32.mrb[15].mxu1 }
 0x339   : > { %v2468_v46 = vmax.f32 %v2457_v41, 0.0  ;;  %v2461_v47 = vadd.f32 %v2460_v45, %v2247_v23 }
 0x33a   : > { %v2469_v48 = vmax.f32 %v2459_v44, 0.0 }
 0x33b   : > { %v2895_v49 = vpack.c.bf16 %v2468_v46, %v2467_v43  ;;  %v2470_v50 = vmax.f32 %v2461_v47, 0.0 }
 0x33d   : > { %2497 = vst [vmem:[%s272_s28 + $0x10] sm:$0xff] %v2895_v49  ;;  %v2896_v51 = vpack.c.bf16 %v2470_v50, %v2469_v48 }
 0x33f   : > { %2498 = vst [vmem:[%s272_s28 + $0x18] sm:$0xff] %v2896_v51 }
 0x340   : > { %3532 = shalt.err (!%p3529_p2)
}
 0x341   : > { %s3533_s24 = scalar_lea.hbm %s3891_s12, 512  ;;  %s3537_s9 = scalar_lea.hbm %s3940_s5, 1024 }
 0x342   : > { %p3534_p13 = scmp.ne.s32.totalorder %s3891_s12, %s3533_s24  ;;  %p3538_p4 = scmp.lt.u32.totalorder %s3891_s12, %s3940_s5 }
 0x343   : > { %p3539_p5 = scmp.lt.u32.totalorder %s3537_s9, %s3533_s24  ;;  %p3541_p11 = scmp.lt.u32.totalorder %s3533_s24, %s3891_s12 }
 0x344   : > { %p3535_p6 = pnand %p3534_p13, %p3954_p0 }
 0x345   : > { %p3540_p8 = por %p3539_p5, %p3538_p4 }
 0x346   : > { %p3536_p10 = pneg %p3535_p6 }
 0x347   : > { %p3542_p1 = por %p3541_p11, %p3540_p8 }
 0x349   : > { %p3543_p3 = pnand %p3542_p1, %p3536_p10 }
 0x34b   : > { %3546 = shalt.err (!%p3543_p3)
}
 0x34c   : > { %s3600_s7 = smov 128   ;;  %s3601_s8 = smov 8  }
 0x34d   : > { %2976 = dma.vmem_to_hbm [thread:$0]  (%p3954_p0), %s3886_s30, 512, %s3891_s12, %s2500_s13, %s3600_s7, %s3600_s7, %s3601_s8  }
 0x34e PF: > { %s2529_s10 = sand.u32 1, %s3577_s18   ;;  %p3955_p7 = scmp.ne.s32.totalorder %s3945_s25, 0 }
 0x34f   : > { %p3956_p9 = scmp.ge.s32.totalorder %s3589_s21, 2  ;;  %s2530_s17 = scalar_lea.sflag [#allocation4], %s2529_s10 }
 0x351   : > { %p2990_p12 = pnand %p3956_p9, %p3955_p7 }
 0x353   : > { %3572 = dma.done.wait (!%p2990_p12), %s2530_s17, 512  }
 0x354   : > { %3574 = vsyncadd (!%p2990_p12), %s2530_s17, 4294966784  ;;  %p19_p2 = scmp.ge.s32.totalorder %s3742_s14, 4   ;;  %s3957_s18 = smov %s3581_s19 }
 0x355   : > { %s3958_s19 = smov %s3585_s20  ;;  %s3959_s20 = smov %s3758_s27 }
 0x356   : > { %s3960_s21 = smov %s3742_s14  ;;  %21 = sbr.rel (!%p19_p2) target bundleno = 6 (0x6), region = 93 }
 0x35d   :  { %2535 = vsyncpa [#allocation3], 1 }
 0x35e   :  { %2537 = vsyncpa [#allocation3 + $0x1], 1 }
 0x35f   :  { %2538 = vsyncpa [#allocation6], 1 }
 0x360   :  { %2539 = vsyncpa [#allocation4], 1 }
 0x361   :  { %2541 = vsyncpa [#allocation4 + $0x1], 1 }

</bundles_post_ra>
